<compile_context>
chip_gen: v6e
topology: v6e:2x2x1
jax: 0.10.0
libtpu: 0.0.40
codegen_flags: <defaults>
</compile_context>

<pallas_src>
import jax
import jax.numpy as jnp
from jax.experimental import pallas as pl
from jax.experimental.pallas import tpu as pltpu


def _round_up(x, m):
    return ((x + m - 1) // m) * m


def _default_compute_dtype():
    """bf16 elementwise math only on v6e / v7x (v5e and older have no bf16 VALU)."""
    try:
        kind = jax.devices()[0].device_kind.lower()
    except Exception:
        return jnp.float32
    for old in ("v2", "v3", "v4", "v5"):
        if old in kind:
            return jnp.float32
    if "v6" in kind or "v7" in kind or "7x" in kind:
        return jnp.bfloat16
    return jnp.float32


def prepare_entity_table(all_ent, *, tile_n=1024, dtype=None):
    """Pre-transpose + pad the entity table once (avoids a per-call HBM round trip)."""
    N, D = all_ent.shape
    dtype = dtype or all_ent.dtype
    n128 = _round_up(N, 128)
    tile_n = _round_up(max(128, min(int(tile_n), n128)), 128)
    # Keep >= 2 "parallel" grid steps when there is enough work (v7x has 2 TCs).
    if n128 >= 256 and n128 // tile_n < 2:
        tile_n = _round_up(pl.cdiv(n128, 2), 128)
    n_pad = _round_up(N, tile_n)
    entT = all_ent.T.astype(dtype)                       # (D, N): entities lane-dense
    if n_pad != N:
        entT = jnp.pad(entT, ((0, 0), (0, n_pad - N)))
    return {"entT": entT, "tile_n": int(tile_n), "n_pad": int(n_pad), "num_ent": int(N)}


def _convkb_score_kernel(a_ent_ref, cT_ref, wfc_ref, entT_ref, out_ref):
    # a_ent_ref: SMEM (F,)      f32 ent-tap scalars of the 1x3 conv (w1[:, 2])
    # cT_ref:    VMEM (D, B*F)  resident columns c[b,f,:] = w1[f,0]*sub + w1[f,1]*rel + b1[f]
    # wfc_ref:   VMEM (F, D)    resident fake-fc weights (MXU LHS rows)
    # entT_ref:  VMEM (D, TN)   entity tile, entities on the lane axis
    # out_ref:   VMEM (B, TN)   sigmoid scores for this entity tile
    D, TN = entT_ref.shape
    F = a_ent_ref.shape[0]
    B = out_ref.shape[0]
    cdtype = entT_ref.dtype

    # TODO(synk): for realistic F (~200) / B (>=64) switch these static Python loops to
    #             lax.fori_loop(..., unroll=True) over f and add a "parallel" batch grid axis.
    acc = [jnp.zeros((1, TN), jnp.float32) for _ in range(B)]
    for f in range(F):
        # f-outer: entity scaling done once per filter (hoisted out of the batch loop);
        # the tile is re-read from the ref per filter to bound vld / live-range pressure.
        a_ent = a_ent_ref[f].astype(cdtype)
        ent_f = a_ent * entT_ref[...]                         # (D, TN)  VPU
        w_row = wfc_ref[pl.ds(f, 1), :]                       # (1, D)
        for b in range(B):
            c_col = cT_ref[:, pl.ds(b * F + f, 1)]            # (D, 1)
            r = jnp.maximum(ent_f + c_col, 0)                 # conv1x3 + bias + ReLU (VPU)
            # Weighted D-reduce on the MXU (frees the binding VALU slot):
            acc[b] = acc[b] + jnp.dot(w_row, r, preferred_element_type=jnp.float32)

    for b in range(B):
        # Per-row, lane-dense stores (no concat / sublane relayout).
        out_ref[pl.ds(b, 1), :] = jax.nn.sigmoid(acc[b]).astype(out_ref.dtype)


def convkb_score(sub_emb, rel_emb, ent_table, w_conv1, b_conv1, w_fc, *,
                 compute_dtype=jnp.float32):
    """score[b, e] = sigmoid(sum_{f,d} w_fc[f,d] * relu(<conv1 taps> + bias))."""
    B, D = sub_emb.shape
    F = b_conv1.shape[0]
    entT = ent_table["entT"]
    tile_n = ent_table["tile_n"]
    n_pad = ent_table["n_pad"]
    N = ent_table["num_ent"]
    assert entT.shape == (D, n_pad)
    assert w_conv1.shape == (F, 3)
    assert w_fc.shape == (F, D)

    # Fold the sub/rel conv taps + bias into per-(batch, filter) columns (f32 precompute,
    # cast once to the streaming dtype). Column index = b*F + f.
    c = (sub_emb[:, None, :].astype(jnp.float32) * w_conv1[None, :, 0:1]
         + rel_emb[:, None, :].astype(jnp.float32) * w_conv1[None, :, 1:2]
         + b_conv1[None, :, None])                                  # (B, F, D)
    cT = c.reshape(B * F, D).T.astype(compute_dtype)                # (D, B*F)

    a_ent = w_conv1[:, 2].astype(jnp.float32)                       # SMEM scalars, 1-D
    wfc = w_fc.astype(compute_dtype)                                # (F, D) MXU LHS rows

    grid = n_pad // tile_n
    esz = jnp.dtype(compute_dtype).itemsize
    per_step = 2 * (D * tile_n * esz + B * tile_n * 4)              # double-buffered tiles
    resident = (B * F * D + F * D) * esz
    vmem_limit = int(min(64 * 1024 * 1024,
                         max(32 * 1024 * 1024, 2 * (per_step + resident))))

    out = pl.pallas_call(
        _convkb_score_kernel,
        out_shape=jax.ShapeDtypeStruct((B, n_pad), jnp.float32),
        grid_spec=pltpu.PrefetchScalarGridSpec(
            num_scalar_prefetch=0,
            grid=(grid,),
            in_specs=[
                pl.BlockSpec(memory_space=pltpu.MemorySpace.SMEM),   # a_ent (F,)
                pl.BlockSpec((D, B * F), lambda j: (0, 0)),          # cT   (resident)
                pl.BlockSpec((F, D), lambda j: (0, 0)),              # wfc  (resident)
                pl.BlockSpec((D, tile_n), lambda j: (0, j)),         # entity tile
            ],
            out_specs=pl.BlockSpec((B, tile_n), lambda j: (0, j)),
        ),
        compiler_params=pltpu.CompilerParams(
            dimension_semantics=("parallel",),
            vmem_limit_bytes=vmem_limit,
        ),
    )(a_ent, cT, wfc, entT)
    return out[:, :N]


class CompGCNConvKBParams:
    """Deterministic stand-in for the torch module's parameters (__init__ shapes)."""

    def __init__(self, key, *, num_ent, num_rel, init_dim, num_filt, hid_drop=0.0,
                 tile_n=1024, compute_dtype=None):
        self.num_ent = num_ent
        self.num_rel = num_rel
        self.init_dim = init_dim
        self.embed_dim = init_dim       # gcn disabled / gcn_layer == 1 => embed_dim = init_dim
        self.num_filt = num_filt
        self.hid_drop = hid_drop        # eval mode: dropout is identity
        self.compute_dtype = jnp.dtype(compute_dtype or _default_compute_dtype())
        k1, k2, k3, k4, k5 = jax.random.split(key, 5)
        # get_param -> xavier-normal-ish init; deterministic normals here.
        self.init_embed = (jax.random.normal(k1, (num_ent, init_dim), jnp.float32)
                           * (2.0 / (num_ent + init_dim)) ** 0.5)
        # num_bases == 0 and score_func != 'transe' -> (num_rel * 2, init_dim)
        self.init_rel = (jax.random.normal(k2, (num_rel * 2, init_dim), jnp.float32)
                         * (2.0 / (num_rel * 2 + init_dim)) ** 0.5)
        self.bias = jnp.zeros((num_ent,), jnp.float32)  # registered, unused by ConvKB score
        # conv2d1 = Conv2d(1, num_filt, kernel_size=(1,3), bias=True) -> weight (F,1,1,3)
        self.conv1_w = jax.random.normal(k3, (num_filt, 3), jnp.float32) * 0.5
        self.conv1_b = jax.random.normal(k4, (num_filt,), jnp.float32) * 0.1
        # fake_fc_with_conv = Conv2d(F, 1, kernel_size=(embed_dim,1), stride=embed_dim,
        #                            bias=False) -> weight (1, F, D, 1)
        self.fc_w = (jax.random.normal(k5, (num_filt, init_dim), jnp.float32)
                     * (2.0 / (num_filt * init_dim + 1)) ** 0.5)
        # Cached entity table: pre-transposed, pre-padded, streaming dtype (eval-mode x).
        self.ent_table = prepare_entity_table(self.init_embed, tile_n=tile_n,
                                              dtype=self.compute_dtype)


def compgcn_convkb_forward(params, sub, rel):
    """Mirrors CompGCN_ConvKB.forward (disable_gnn_encoder=True path)."""
    x = params.init_embed                      # drop1 is identity (eval)
    r = params.init_rel                        # score_func != 'transe'
    sub_emb = jnp.take(x, sub, axis=0)         # (B, D) glue gather
    rel_emb = jnp.take(r, rel, axis=0)         # (B, D) glue gather
    # Hot path (conv1x3 + relu + fake-fc reduce + sigmoid over all entities)
    # runs in the Pallas kernel, entities on the lane axis.
    score = convkb_score(sub_emb, rel_emb, params.ent_table,
                         params.conv1_w, params.conv1_b, params.fc_w,
                         compute_dtype=params.compute_dtype)
    return score                               # (B, num_ent)


if __name__ == "__main__":
    key = jax.random.PRNGKey(0)
    kp, ks, kr = jax.random.split(key, 3)

    NUM_ENT = 1000       # not a multiple of 128/512: exercises tail padding
    NUM_REL = 4
    INIT_DIM = 32        # embed_dim == init_dim on this path
    NUM_FILT = 4
    BATCH = 2

    params = CompGCNConvKBParams(
        kp, num_ent=NUM_ENT, num_rel=NUM_REL, init_dim=INIT_DIM, num_filt=NUM_FILT)

    sub = jax.random.randint(ks, (BATCH,), 0, NUM_ENT, dtype=jnp.int32)
    rel = jax.random.randint(kr, (BATCH,), 0, NUM_REL * 2, dtype=jnp.int32)

    score = compgcn_convkb_forward(params, sub, rel)
    score = jax.block_until_ready(score)

    # Pure-JAX f32 reference (matches the torch conv stack element-by-element).
    sub_emb = jnp.take(params.init_embed, sub, axis=0)
    rel_emb = jnp.take(params.init_rel, rel, axis=0)
    w1, b1, wfc = params.conv1_w, params.conv1_b, params.fc_w
    z = (sub_emb[:, None, None, :] * w1[:, 0][None, :, None, None]
         + rel_emb[:, None, None, :] * w1[:, 1][None, :, None, None]
         + params.init_embed[None, None, :, :] * w1[:, 2][None, :, None, None]
         + b1[None, :, None, None])                      # (B, F, N, D)
    ref = jax.nn.sigmoid(jnp.einsum('bfnd,fd->bn', jnp.maximum(z, 0.0), wfc))

    if params.compute_dtype == jnp.dtype(jnp.bfloat16):
        atol = rtol = 3e-2   # bf16-streamed elementwise math, f32 accumulation
    else:
        atol = rtol = 1e-5
    assert score.shape == (BATCH, NUM_ENT)
    assert jnp.allclose(score, ref, atol=atol, rtol=rtol)

    print("KERNEL_OK")
</pallas_src>

<mosaic_0001>
module attributes {stable_mosaic.version = 11 : i64} {
  func.func @_convkb_score_kernel(%arg0: i32, %arg1: memref<4xf32, #tpu.memory_space<smem>>, %arg2: memref<32x8xf32, #tpu.memory_space<vmem>>, %arg3: memref<4x32xf32, #tpu.memory_space<vmem>>, %arg4: memref<32x512xf32, #tpu.memory_space<vmem>>, %arg5: memref<2x512xf32, #tpu.memory_space<vmem>>) attributes {dimension_semantics = [#tpu.dimension_semantics<parallel>], iteration_bounds = array<i64: 2>, scalar_prefetch = 0 : i64, scratch_operands = 0 : i64, tpu.core_type = #tpu.core_type<tc>, window_params = [{transform_indices = @transform_0, window_bounds = array<i64: 4>}, {pipeline_mode = #tpu.pipeline_mode<synchronous>, transform_indices = @transform_1, window_bounds = array<i64: 32, 8>}, {pipeline_mode = #tpu.pipeline_mode<synchronous>, transform_indices = @transform_2, window_bounds = array<i64: 4, 32>}, {transform_indices = @transform_3, window_bounds = array<i64: 32, 512>}, {transform_indices = @transform_4, window_bounds = array<i64: 2, 512>}]} {
    %cst = arith.constant 0.000000e+00 : f32
    %0 = vector.broadcast %cst : f32 to vector<1x512xf32>
    %cst_0 = arith.constant 0.000000e+00 : f32
    %1 = vector.broadcast %cst_0 : f32 to vector<1x512xf32>
    %c0 = arith.constant 0 : index
    %2 = memref.load %arg1[%c0] : memref<4xf32, #tpu.memory_space<smem>>
    %c0_1 = arith.constant 0 : index
    %c0_2 = arith.constant 0 : index
    %3 = vector.load %arg4[%c0_1, %c0_2] : memref<32x512xf32, #tpu.memory_space<vmem>>, vector<32x512xf32>
    %4 = vector.broadcast %2 : f32 to vector<32x512xf32>
    %5 = arith.mulf %4, %3 : vector<32x512xf32>
    %c0_3 = arith.constant 0 : index
    %c0_4 = arith.constant 0 : index
    %6 = vector.load %arg3[%c0_3, %c0_4] : memref<4x32xf32, #tpu.memory_space<vmem>>, vector<1x32xf32>
    %c0_5 = arith.constant 0 : index
    %c0_6 = arith.constant 0 : index
    %7 = vector.load %arg2[%c0_5, %c0_6] : memref<32x8xf32, #tpu.memory_space<vmem>>, vector<32x1xf32>
    %8 = vector.broadcast %7 : vector<32x1xf32> to vector<32x512xf32>
    %9 = arith.addf %5, %8 : vector<32x512xf32>
    %cst_7 = arith.constant 0.000000e+00 : f32
    %10 = vector.broadcast %cst_7 : f32 to vector<32x512xf32>
    %11 = arith.maximumf %9, %10 : vector<32x512xf32>
    %cst_8 = arith.constant dense<0.000000e+00> : vector<1x512xf32>
    %12 = tpu.matmul %6, %11, %cst_8 {dimension_numbers = #tpu.dot_dimension_numbers<[1], [0], [0], [1], [0, 0, 1, 1], [], []>} : vector<1x32xf32>, vector<32x512xf32>, vector<1x512xf32> -> vector<1x512xf32>
    %13 = arith.addf %0, %12 : vector<1x512xf32>
    %c0_9 = arith.constant 0 : index
    %c4 = arith.constant 4 : index
    %14 = vector.load %arg2[%c0_9, %c4] : memref<32x8xf32, #tpu.memory_space<vmem>>, vector<32x1xf32>
    %15 = vector.broadcast %14 : vector<32x1xf32> to vector<32x512xf32>
    %16 = arith.addf %5, %15 : vector<32x512xf32>
    %cst_10 = arith.constant 0.000000e+00 : f32
    %17 = vector.broadcast %cst_10 : f32 to vector<32x512xf32>
    %18 = arith.maximumf %16, %17 : vector<32x512xf32>
    %cst_11 = arith.constant dense<0.000000e+00> : vector<1x512xf32>
    %19 = tpu.matmul %6, %18, %cst_11 {dimension_numbers = #tpu.dot_dimension_numbers<[1], [0], [0], [1], [0, 0, 1, 1], [], []>} : vector<1x32xf32>, vector<32x512xf32>, vector<1x512xf32> -> vector<1x512xf32>
    %20 = arith.addf %1, %19 : vector<1x512xf32>
    %c1 = arith.constant 1 : index
    %21 = memref.load %arg1[%c1] : memref<4xf32, #tpu.memory_space<smem>>
    %c0_12 = arith.constant 0 : index
    %c0_13 = arith.constant 0 : index
    %22 = vector.load %arg4[%c0_12, %c0_13] : memref<32x512xf32, #tpu.memory_space<vmem>>, vector<32x512xf32>
    %23 = vector.broadcast %21 : f32 to vector<32x512xf32>
    %24 = arith.mulf %23, %22 : vector<32x512xf32>
    %c1_14 = arith.constant 1 : index
    %c0_15 = arith.constant 0 : index
    %25 = vector.load %arg3[%c1_14, %c0_15] : memref<4x32xf32, #tpu.memory_space<vmem>>, vector<1x32xf32>
    %c0_16 = arith.constant 0 : index
    %c1_17 = arith.constant 1 : index
    %26 = vector.load %arg2[%c0_16, %c1_17] : memref<32x8xf32, #tpu.memory_space<vmem>>, vector<32x1xf32>
    %27 = vector.broadcast %26 : vector<32x1xf32> to vector<32x512xf32>
    %28 = arith.addf %24, %27 : vector<32x512xf32>
    %cst_18 = arith.constant 0.000000e+00 : f32
    %29 = vector.broadcast %cst_18 : f32 to vector<32x512xf32>
    %30 = arith.maximumf %28, %29 : vector<32x512xf32>
    %cst_19 = arith.constant dense<0.000000e+00> : vector<1x512xf32>
    %31 = tpu.matmul %25, %30, %cst_19 {dimension_numbers = #tpu.dot_dimension_numbers<[1], [0], [0], [1], [0, 0, 1, 1], [], []>} : vector<1x32xf32>, vector<32x512xf32>, vector<1x512xf32> -> vector<1x512xf32>
    %32 = arith.addf %13, %31 : vector<1x512xf32>
    %c0_20 = arith.constant 0 : index
    %c5 = arith.constant 5 : index
    %33 = vector.load %arg2[%c0_20, %c5] : memref<32x8xf32, #tpu.memory_space<vmem>>, vector<32x1xf32>
    %34 = vector.broadcast %33 : vector<32x1xf32> to vector<32x512xf32>
    %35 = arith.addf %24, %34 : vector<32x512xf32>
    %cst_21 = arith.constant 0.000000e+00 : f32
    %36 = vector.broadcast %cst_21 : f32 to vector<32x512xf32>
    %37 = arith.maximumf %35, %36 : vector<32x512xf32>
    %cst_22 = arith.constant dense<0.000000e+00> : vector<1x512xf32>
    %38 = tpu.matmul %25, %37, %cst_22 {dimension_numbers = #tpu.dot_dimension_numbers<[1], [0], [0], [1], [0, 0, 1, 1], [], []>} : vector<1x32xf32>, vector<32x512xf32>, vector<1x512xf32> -> vector<1x512xf32>
    %39 = arith.addf %20, %38 : vector<1x512xf32>
    %c2 = arith.constant 2 : index
    %40 = memref.load %arg1[%c2] : memref<4xf32, #tpu.memory_space<smem>>
    %c0_23 = arith.constant 0 : index
    %c0_24 = arith.constant 0 : index
    %41 = vector.load %arg4[%c0_23, %c0_24] : memref<32x512xf32, #tpu.memory_space<vmem>>, vector<32x512xf32>
    %42 = vector.broadcast %40 : f32 to vector<32x512xf32>
    %43 = arith.mulf %42, %41 : vector<32x512xf32>
    %c2_25 = arith.constant 2 : index
    %c0_26 = arith.constant 0 : index
    %44 = vector.load %arg3[%c2_25, %c0_26] : memref<4x32xf32, #tpu.memory_space<vmem>>, vector<1x32xf32>
    %c0_27 = arith.constant 0 : index
    %c2_28 = arith.constant 2 : index
    %45 = vector.load %arg2[%c0_27, %c2_28] : memref<32x8xf32, #tpu.memory_space<vmem>>, vector<32x1xf32>
    %46 = vector.broadcast %45 : vector<32x1xf32> to vector<32x512xf32>
    %47 = arith.addf %43, %46 : vector<32x512xf32>
    %cst_29 = arith.constant 0.000000e+00 : f32
    %48 = vector.broadcast %cst_29 : f32 to vector<32x512xf32>
    %49 = arith.maximumf %47, %48 : vector<32x512xf32>
    %cst_30 = arith.constant dense<0.000000e+00> : vector<1x512xf32>
    %50 = tpu.matmul %44, %49, %cst_30 {dimension_numbers = #tpu.dot_dimension_numbers<[1], [0], [0], [1], [0, 0, 1, 1], [], []>} : vector<1x32xf32>, vector<32x512xf32>, vector<1x512xf32> -> vector<1x512xf32>
    %51 = arith.addf %32, %50 : vector<1x512xf32>
    %c0_31 = arith.constant 0 : index
    %c6 = arith.constant 6 : index
    %52 = vector.load %arg2[%c0_31, %c6] : memref<32x8xf32, #tpu.memory_space<vmem>>, vector<32x1xf32>
    %53 = vector.broadcast %52 : vector<32x1xf32> to vector<32x512xf32>
    %54 = arith.addf %43, %53 : vector<32x512xf32>
    %cst_32 = arith.constant 0.000000e+00 : f32
    %55 = vector.broadcast %cst_32 : f32 to vector<32x512xf32>
    %56 = arith.maximumf %54, %55 : vector<32x512xf32>
    %cst_33 = arith.constant dense<0.000000e+00> : vector<1x512xf32>
    %57 = tpu.matmul %44, %56, %cst_33 {dimension_numbers = #tpu.dot_dimension_numbers<[1], [0], [0], [1], [0, 0, 1, 1], [], []>} : vector<1x32xf32>, vector<32x512xf32>, vector<1x512xf32> -> vector<1x512xf32>
    %58 = arith.addf %39, %57 : vector<1x512xf32>
    %c3 = arith.constant 3 : index
    %59 = memref.load %arg1[%c3] : memref<4xf32, #tpu.memory_space<smem>>
    %c0_34 = arith.constant 0 : index
    %c0_35 = arith.constant 0 : index
    %60 = vector.load %arg4[%c0_34, %c0_35] : memref<32x512xf32, #tpu.memory_space<vmem>>, vector<32x512xf32>
    %61 = vector.broadcast %59 : f32 to vector<32x512xf32>
    %62 = arith.mulf %61, %60 : vector<32x512xf32>
    %c3_36 = arith.constant 3 : index
    %c0_37 = arith.constant 0 : index
    %63 = vector.load %arg3[%c3_36, %c0_37] : memref<4x32xf32, #tpu.memory_space<vmem>>, vector<1x32xf32>
    %c0_38 = arith.constant 0 : index
    %c3_39 = arith.constant 3 : index
    %64 = vector.load %arg2[%c0_38, %c3_39] : memref<32x8xf32, #tpu.memory_space<vmem>>, vector<32x1xf32>
    %65 = vector.broadcast %64 : vector<32x1xf32> to vector<32x512xf32>
    %66 = arith.addf %62, %65 : vector<32x512xf32>
    %cst_40 = arith.constant 0.000000e+00 : f32
    %67 = vector.broadcast %cst_40 : f32 to vector<32x512xf32>
    %68 = arith.maximumf %66, %67 : vector<32x512xf32>
    %cst_41 = arith.constant dense<0.000000e+00> : vector<1x512xf32>
    %69 = tpu.matmul %63, %68, %cst_41 {dimension_numbers = #tpu.dot_dimension_numbers<[1], [0], [0], [1], [0, 0, 1, 1], [], []>} : vector<1x32xf32>, vector<32x512xf32>, vector<1x512xf32> -> vector<1x512xf32>
    %70 = arith.addf %51, %69 : vector<1x512xf32>
    %c0_42 = arith.constant 0 : index
    %c7 = arith.constant 7 : index
    %71 = vector.load %arg2[%c0_42, %c7] : memref<32x8xf32, #tpu.memory_space<vmem>>, vector<32x1xf32>
    %72 = vector.broadcast %71 : vector<32x1xf32> to vector<32x512xf32>
    %73 = arith.addf %62, %72 : vector<32x512xf32>
    %cst_43 = arith.constant 0.000000e+00 : f32
    %74 = vector.broadcast %cst_43 : f32 to vector<32x512xf32>
    %75 = arith.maximumf %73, %74 : vector<32x512xf32>
    %cst_44 = arith.constant dense<0.000000e+00> : vector<1x512xf32>
    %76 = tpu.matmul %63, %75, %cst_44 {dimension_numbers = #tpu.dot_dimension_numbers<[1], [0], [0], [1], [0, 0, 1, 1], [], []>} : vector<1x32xf32>, vector<32x512xf32>, vector<1x512xf32> -> vector<1x512xf32>
    %77 = arith.addf %58, %76 : vector<1x512xf32>
    %78 = arith.negf %70 : vector<1x512xf32>
    %79 = math.exp %78 : vector<1x512xf32>
    %cst_45 = arith.constant 1.000000e+00 : f32
    %80 = vector.broadcast %cst_45 : f32 to vector<1x512xf32>
    %81 = arith.addf %80, %79 : vector<1x512xf32>
    %82 = arith.divf %80, %81 : vector<1x512xf32>
    %c0_46 = arith.constant 0 : index
    %c0_47 = arith.constant 0 : index
    %83 = vector.load %arg5[%c0_46, %c0_47] : memref<2x512xf32, #tpu.memory_space<vmem>>, vector<1x512xf32>
    tpu.vector_store %arg5[%c0_46, %c0_47], %82 {strides = array<i32>} : memref<2x512xf32, #tpu.memory_space<vmem>>, vector<1x512xf32>,
    %84 = arith.negf %77 : vector<1x512xf32>
    %85 = math.exp %84 : vector<1x512xf32>
    %cst_48 = arith.constant 1.000000e+00 : f32
    %86 = vector.broadcast %cst_48 : f32 to vector<1x512xf32>
    %87 = arith.addf %86, %85 : vector<1x512xf32>
    %88 = arith.divf %86, %87 : vector<1x512xf32>
    %c1_49 = arith.constant 1 : index
    %c0_50 = arith.constant 0 : index
    %89 = vector.load %arg5[%c1_49, %c0_50] : memref<2x512xf32, #tpu.memory_space<vmem>>, vector<1x512xf32>
    tpu.vector_store %arg5[%c1_49, %c0_50], %88 {strides = array<i32>} : memref<2x512xf32, #tpu.memory_space<vmem>>, vector<1x512xf32>,
    return
  }
  func.func @transform_0(%arg0: i32) -> i32 {
    %c0_i32 = arith.constant 0 : i32
    %c0_i32_0 = arith.constant 0 : i32
    return %c0_i32 : i32
  }
  func.func @transform_1(%arg0: i32) -> (i32, i32) {
    %c0_i32 = arith.constant 0 : i32
    %c0_i32_0 = arith.constant 0 : i32
    %c0_i32_1 = arith.constant 0 : i32
    return %c0_i32, %c0_i32_0 : i32, i32
  }
  func.func @transform_2(%arg0: i32) -> (i32, i32) {
    %c0_i32 = arith.constant 0 : i32
    %c0_i32_0 = arith.constant 0 : i32
    %c0_i32_1 = arith.constant 0 : i32
    return %c0_i32, %c0_i32_0 : i32, i32
  }
  func.func @transform_3(%arg0: i32) -> (i32, i32) {
    %c0_i32 = arith.constant 0 : i32
    %c0_i32_0 = arith.constant 0 : i32
    return %c0_i32, %arg0 : i32, i32
  }
  func.func @transform_4(%arg0: i32) -> (i32, i32) {
    %c0_i32 = arith.constant 0 : i32
    %c0_i32_0 = arith.constant 0 : i32
    return %c0_i32, %arg0 : i32, i32
  }
}

</mosaic_0001>

<bundles_post_ra>
// kernel: tpu_custom_call.1
= control target key start
LH: loop header
LB: loop body
LE: loop exit
PB: predicated region body
PF: predicated region fallthrough
CT: control target
= control target key end

     0   :  { %9 = vsyncpa [#allocation5], 0  ;;  %s3085_s0 = inlined_call_operand.vmem [shape: f32[4], index: 0, kind: input, shape index: {}]   ;;  %s3086_s1 = inlined_call_operand.vmem [shape: f32[32,8], index: 1, kind: input, shape index: {}]   ;;  %s3087_s2 = inlined_call_operand.vmem [shape: f32[4,32], index: 2, kind: input, shape index: {}]   ;;  %s3088_s3 = inlined_call_operand.hbm [shape: f32[32,1024], index: 3, kind: input, shape index: {}]   ;;  %s3089_s4 = inlined_call_operand.hbm [shape: f32[2,1024], index: 4, kind: output, shape index: {}]  }
   0x1   :  { %10 = vsyncpa [#allocation3], 0 }
   0x2   :  { %12 = vsyncpa [#allocation3 + $0x1], 0 }
   0x3   :  { %13 = vsyncpa [#allocation4], 0 }
   0x4   :  { %15 = vsyncpa [#allocation4 + $0x1], 0  ;;  %s2409_s15 = smov 0   ;;  %s2411_s16 = smov 0  }
   0x5   :  { %s2413_s17 = smov 0   ;;  %s2415_s18 = smov 0  }
   0x6 LB: > { %s2430_s19 = sadd.s32 4294967295, %s2366_s18   ;;  %s2091_s20 = sadd.s32 4294967294, %s2366_s18   ;;  %s2366_s18 = sphi %s2415_s18, %s3156_s18   ;;  %s2362_s17 = sphi %s2413_s17, %s3155_s17   ;;  %s2358_s16 = sphi %s2411_s16, %s3154_s16   ;;  %s2354_s15 = sphi %s2409_s15, %s3153_s15  }
   0x7   : > { %s2434_s21 = sadd.s32 1, %s2366_s18   ;;  %s91_s22 = sadd.s32 1, %s2362_s17 }
   0x8   : > { %s88_s23 = ssub.s32 %s2366_s18, %s2434_s21  ;;  %p98_p0 = scmp.ne.s32.totalorder %s2362_s17, %s2358_s16 }
   0x9   : > { %p89_p1 = scmp.eq.s32.totalorder %s88_s23, 0  ;;  %p99_p2 = scmp.eq.s32.totalorder %s2366_s18, 0 }
   0xa   : > { %p104_p3 = scmp.ne.s32.totalorder %s2358_s16, %s2354_s15  ;;  %p3091_p4 = scmp.eq.s32.totalorder %s2430_s19, 0 }
   0xb   : > { %s2446_s24 = scalar_select %p89_p1, %s2362_s17, %s91_s22  }
   0xc   : > { %p2448_p5 = por %p99_p2, %p98_p0  ;;  %p2454_p6 = por %p3091_p4, %p104_p3 }
   0xd   : > { %p128_p7 = scmp.eq.s32.totalorder %s2430_s19, 1  ;;  %p134_p8 = scmp.eq.s32.totalorder %s2091_s20, 1 }
   0xe   : > { %s3115_s26 = scalar_select %p2454_p6, 1, 0 }
   0xf   : > { %p2092_p9 = scmp.ge.s32.totalorder %s2366_s18, 1  ;;  %p141_p10 = scmp.lt.s32.totalorder %s2366_s18, 3 }
  0x10   : > { %p2461_p11 = por %p128_p7, %p98_p0  ;;  %p2465_p12 = por %p134_p8, %p104_p3 }
  0x11   : > { %p2469_p13 = pnand %p2092_p9, %p141_p10  ;;  %s154_s6 = sshll.u32 %s3085_s0, 4  ;;  %s155_s6 = int_to_ptr.vmem [resolvable:$true] %s154_s6 }
  0x12   : > { %s3116_s27 = scalar_select %p2461_p11, 1, 0 }
  0x13   : > { %s3117_s28 = scalar_select %p2465_p12, 1, 0 }
  0x14   : > { %s3118_s29 = scalar_select %p2469_p13, 1, 0 }
  0x15   : > { %p2145_p1 = pneg %p2469_p13  ;;  %p2158_p2 = scmp.lt.s32.totalorder %s2366_s18, 2 }
  0x16   : > { %s171_s8 = sand.u32 1, %s2362_s17   ;;  %s2255_s11 = scalar_lea.vmem %s155_s6, 16 }
  0x17   : > { %p2482_p7 = pnand %p2145_p1, %p3091_p4  ;;  %p2489_p3 = pnand %p2158_p2, %p2448_p5 }
  0x18   : > { %s2095_s10 = sshll.u32 %s171_s8, 7  ;;  %p2256_p8 = scmp.ne.s32.totalorder %s155_s6, %s2255_s11 }
  0x19   : > { %p2257_p9 = pneg %p2482_p7  ;;  %p2263_p12 = scmp.lt.s32.totalorder %s155_s6, %s155_s6 }
  0x1a   : > { %p2264_p11 = scmp.lt.s32.totalorder %s2255_s11, %s2255_s11 }
  0x1b   : > { %p2258_p10 = pnand %p2257_p9, %p2256_p8 }
  0x1c   : > { %p2265_p1 = por %p2264_p11, %p2263_p12 }
  0x1d   : > { %p2259_p0 = pneg %p2258_p10 }
  0x1f   : > { %p2266_p4 = pnand %p2265_p1, %p2259_p0 }
  0x21   : > { %2269 = shalt.err (!%p2266_p4)
}
  0x22   : > { %s2368_s12 = smov [#allocation2]   ;;  %s2135_s13 = sshll.u32 %s2366_s18, 9 }
  0x23   : > { %2148 = dma.vmem_to_smem (!%p2482_p7), %s155_s6, 16, %s2368_s12, [#allocation5]  }
  0x24   : > { %s175_s14 = scalar_lea.vmem [#allocation6], %s2095_s10  ;;  %s2501_s25 = scalar_lea.hbm %s3088_s3, %s2135_s13 }
  0x25   : > { %s182_s20 = sshll.u32 %s175_s14, 4  ;;  %s2505_s30 = scalar_lea.sflag [#allocation3], %s171_s8  ;;  %s2503_s20 = int_to_ptr.vmem [resolvable:$true] %s182_s20 }
  0x26   : > { %s2270_s5 = scalar_lea.hbm %s2501_s25, 2048  ;;  %p2272_p5 = pneg %p2489_p3 }
  0x27   : > { %p2271_p4 = scmp.ne.s32.totalorder %s2501_s25, %s2270_s5  ;;  %s2275_s10 = scalar_lea.hbm %s3088_s3, 4096 }
  0x28   : > { %p2276_p0 = scmp.lt.s32.totalorder %s2501_s25, %s3088_s3  ;;  %p2277_p2 = scmp.lt.s32.totalorder %s2275_s10, %s2270_s5 }
  0x29   : > { %p2273_p11 = pnand %p2272_p5, %p2271_p4 }
  0x2a   : > { %p2278_p7 = por %p2277_p2, %p2276_p0 }
  0x2b   : > { %p2274_p12 = pneg %p2273_p11 }
  0x2d   : > { %p2279_p8 = pnand %p2278_p7, %p2274_p12 }
  0x2f   : > { %2282 = shalt.err (!%p2279_p8)
}
  0x30   : > { %s2283_s8 = scalar_lea.vmem %s2503_s20, 2048  ;;  %s2369_s13 = smov [#allocation6]  }
  0x31   : > { %p2284_p9 = scmp.ne.s32.totalorder %s2503_s20, %s2283_s8  ;;  %s2288_s14 = sshll.u32 %s2369_s13, 4  ;;  %s2289_s14 = int_to_ptr.vmem [resolvable:$false] %s2288_s14 }
  0x32   : > { %s2290_s22 = scalar_lea.vmem %s2289_s14, 4096  ;;  %p2291_p4 = scmp.lt.s32.totalorder %s2503_s20, %s2289_s14 }
  0x33   : > { %p2286_p10 = pnand %p2284_p9, %p2272_p5  ;;  %p2292_p11 = scmp.lt.s32.totalorder %s2290_s22, %s2283_s8 }
  0x35   : > { %p2287_p1 = pneg %p2286_p10  ;;  %p2293_p6 = por %p2292_p11, %p2291_p4 }
  0x37   : > { %p2294_p13 = pnand %p2293_p6, %p2287_p1 }
  0x39   : > { %2297 = shalt.err (!%p2294_p13)
}
  0x3a   : > { %s2370_s23 = smov 1024   ;;  %s2371_s5 = smov 512  }
  0x3b   : > { %s2372_s6 = smov 32   ;;  %p3121_p5 = scmp.ne.s32.totalorder %s3118_s29, 0 }
  0x3c   : > { %2152 = dma.hbm_to_vmem [thread:$0]  (!%p2489_p3), %s2501_s25, 2048, %s2503_s20, %s2505_s30, %s2370_s23, %s2371_s5, %s2372_s6  }
  0x3d   : > { %194 = sbr.rel (%p3121_p5) target bundleno = 539 (0x21b), region = 36 }
  0x42   : > { %p3122_p12 = scmp.eq.s32.totalorder %s2430_s19, 0 }
  0x44   : > { %2341 = dma.done.wait (%p3122_p12), [#allocation5], 16   ;;  %p3123_p0 = pmov %p3122_p12 }
  0x45   : > { %s2533_s7 = sand.u32 1, %s2358_s16   ;;  %p3124_p6 = scmp.ne.s32.totalorder %s3115_s26, 0 }
  0x46   : > { %2343 = vsyncadd (%p3123_p0), [#allocation5], 4294967280  ;;  %s2100_s10 = sshll.u32 %s2533_s7, 7  ;;  %s201_s11 = scalar_lea.sflag [#allocation3], %s2533_s7 }
  0x47   : > { %s2537_s12 = scalar_lea.vmem [#allocation6], %s2100_s10 }
  0x48   : > { %2345 = dma.done.wait (%p3124_p6), %s201_s11, 2048  }
  0x49   : > { %2347 = vsyncadd (%p3124_p6), %s201_s11, 4294965248 }
  0x4a   : > { %209 = sfence }
  0x4b   : > { %v270_v0 = vld [vmem:[%s3086_s1 + $0x18] sm:$0xff]  ;;  %v268_v1 = vld [vmem:[%s3086_s1 + $0x8] sm:$0xff]  ;;  %v2373_v2 = vmov 1   ;;  %v269_v3 = vld [vmem:[%s3086_s1 + $0x10] sm:$0xff]  ;;  %v2374_v5 = vmov 0   ;;  %v3094_v6 = vmov 0.0  }
  0x4c   : > { %2208 = vset.pattern.permute.xlu1 %v2373_v2  ;;  %2207 = vset.pattern.permute.xlu0 %v2373_v2  ;;  %v267_v4 = vld [vmem:[%s3086_s1] sm:$0xff]  ;;  %v2376_v7 = vmov 5   ;;  %v2377_v8 = vmov 4   ;;  %v2378_v9 = vmov 2   ;;  %v2379_v10 = vmov 6   ;;  %s232_s14 = sld [smem:[#allocation2]] }
  0x4d   : > { %403 = vperm.xlu0 %2207, %v270_v0   ;;  %395 = vperm.xlu1 %2208, %v268_v1   ;;  %v2380_v11 = vmov 3   ;;  %v2381_v12 = vmov 7   ;;  %s2102_s22 = sld [smem:[#allocation2 + $0x1]]  ;;  %v2558_v13 = vld [vmem:[%s2537_s12 + $0x68] sm:$0xff]  ;;  %v2561_v14 = vld [vmem:[%s2537_s12 + $0x78] sm:$0xff]  ;;  %v2564_v15 = vld [vmem:[%s2537_s12 + $0x60] sm:$0xff] }
  0x4e   : > { %506 = vmatprep.mubr.f32.mxu0 %v3094_v6  ;;  %577 = vmatprep.mubr.f32.mxu1 %v3094_v6  ;;  %v2567_v16 = vld [vmem:[%s2537_s12 + $0x70] sm:$0xff]  ;;  %v2570_v17 = vld [vmem:[%s2537_s12 + $0x40] sm:$0xff]  ;;  %v2575_v19 = vld [vmem:[%s2537_s12 + $0x48] sm:$0xff]  ;;  %vm438_vm0 = vcmask 261120   ;;  %s2747_s6 = sld [smem:[#allocation2 + $0x2]]  ;;  %s2101_s30 = sshll.u32 %s2533_s7, 3 }
  0x4f   : > { %v2578_v20 = vld [vmem:[%s2537_s12 + $0x58] sm:$0xff]  ;;  %v2581_v22 = vld [vmem:[%s2537_s12 + $0x50] sm:$0xff]  ;;  %v2584_v23 = vld [vmem:[%s2537_s12 + $0x28] sm:$0xff]  ;;  %s229_s8 = scalar_lea.vmem [#allocation7], %s2101_s30  ;;  %s2136_s26 = sshll.u32 %s2430_s19, 7 }
  0x50   : > { %3125 = vst [vmem:[#allocation11_spill] sm:$0xff] %v2578_v20  ;;  %3126 = vst [vmem:[#allocation12_spill] sm:$0xff] %v2584_v23  ;;  %v2599_v28 = vld [vmem:[%s2537_s12 + $0x38] sm:$0xff]  ;;  %v2602_v29 = vld [vmem:[%s2537_s12 + $0x20] sm:$0xff]  ;;  %s2009_s13 = sshll.u32 %s229_s8, 4  ;;  %s2007_s23 = scalar_lea.hbm %s3089_s4, %s2136_s26  ;;  %s2010_s13 = int_to_ptr.vmem [resolvable:$true] %s2009_s13 }
  0x51   : > { %399 = vperm.xlu0 %2207, %v269_v3   ;;  %391 = vperm.xlu1 %2208, %v267_v4   ;;  %3127 = vst [vmem:[#allocation13_spill] sm:$0xff] %v2599_v28  ;;  %v2605_v30 = vld [vmem:[%s2537_s12 + $0x30] sm:$0xff]  ;;  %v2621_v35 = vld [vmem:[%s2537_s12 + $0x8] sm:$0xff]  ;;  %v2624_v36 = vld [vmem:[%s2537_s12 + $0x18] sm:$0xff]  ;;  %s1995_s5 = scalar_lea.sflag [#allocation4], %s2533_s7  ;;  %p3150_p3 = scmp.ne.s32.totalorder %s3116_s27, 0 }
  0x52   : > { %v2572_v18 = vstv %s232_s14  ;;  %3128 = vst [vmem:[#allocation14_spill] sm:$0xff] %v2621_v35  ;;  %3129 = vst [vmem:[#allocation15_spill] sm:$0xff] %v2624_v36  ;;  %v2642_v41 = vld [vmem:[%s2537_s12] sm:$0xff]  ;;  %v2645_v42 = vld [vmem:[%s2537_s12 + $0x10] sm:$0xff]  ;;  %s2846_s12 = sld [smem:[#allocation2 + $0x3]]  ;;  %s2383_s10 = smov [#allocation7]  }
  0x53   : > { %v372_v21 = vstv %s2102_s22  ;;  %v2609_v31 = vmul.f32 %v2572_v18, %v2570_v17  ;;  %v2628_v37 = vmul.f32 %v2572_v18, %v2581_v22  ;;  %v2632_v38 = vmul.f32 %v2572_v18, %v2564_v15  ;;  %3130 = vst [vmem:[#allocation16_spill] sm:$0xff] %v2642_v41  ;;  %3131 = vst [vmem:[#allocation17_spill] sm:$0xff] %v2645_v42  ;;  %s2302_s11 = sshll.u32 %s2383_s10, 4  ;;  %s2303_s11 = int_to_ptr.vmem [resolvable:$false] %s2302_s11 }
  0x54   : > { %v2587_v24 = vmul.f32 %v372_v21, %v2558_v13  ;;  %v2590_v25 = vmul.f32 %v372_v21, %v2561_v14  ;;  %v2593_v26 = vmul.f32 %v372_v21, %v2564_v15  ;;  %v2596_v27 = vmul.f32 %v372_v21, %v2567_v16  ;;  %s2304_s19 = scalar_lea.vmem %s2303_s11, 256  ;;  %p2305_p8 = scmp.lt.s32.totalorder %s2010_s13, %s2303_s11 }
  0x55   : > { %2210 = vset.pattern.permute.xlu1 %v2374_v5  ;;  %2209 = vset.pattern.permute.xlu0 %v2374_v5  ;;  %v2612_v32 = vmul.f32 %v372_v21, %v2575_v19  ;;  %v2615_v33 = vmul.f32 %v372_v21, %v2578_v20  ;;  %v2618_v34 = vmul.f32 %v372_v21, %v2570_v17 }
  0x56   : > { %283 = vperm.xlu1 %2210, %v269_v3   ;;  %288 = vperm.xlu0 %2209, %v270_v0   ;;  %v2636_v39 = vmul.f32 %v2572_v18, %v2567_v16  ;;  %v2639_v40 = vmul.f32 %v372_v21, %v2581_v22  ;;  %v2648_v43 = vmul.f32 %v372_v21, %v2584_v23 }
  0x57   : > { %v2651_v44 = vmul.f32 %v372_v21, %v2599_v28  ;;  %v2654_v45 = vmul.f32 %v372_v21, %v2602_v29  ;;  %v2657_v46 = vmul.f32 %v372_v21, %v2605_v30  ;;  %v2661_v47 = vmul.f32 %v2572_v18, %v2602_v29 }
  0x58   : > { %v2665_v48 = vmul.f32 %v2572_v18, %v2605_v30  ;;  %v2668_v49 = vmul.f32 %v372_v21, %v2621_v35  ;;  %v2671_v50 = vmul.f32 %v372_v21, %v2624_v36  ;;  %v2674_v53 = vmul.f32 %v372_v21, %v2642_v41 }
  0x59   : > { %3132 = vst [vmem:[#allocation18_spill] sm:$0xff] %v2661_v47  ;;  %v2677_v54 = vmul.f32 %v372_v21, %v2645_v42  ;;  %v2681_v55 = vmul.f32 %v2572_v18, %v2558_v13  ;;  %v2685_v56 = vmul.f32 %v2572_v18, %v2561_v14  ;;  %v2693_v61 = vmul.f32 %v2572_v18, %v2642_v41 }
  0x5a   : > { %278 = vperm.xlu1 %2210, %v268_v1   ;;  %273 = vperm.xlu0 %2209, %v267_v4   ;;  %3133 = vst [vmem:[#allocation19_spill] sm:$0xff] %v2665_v48  ;;  %v2697_v62 = vmul.f32 %v2572_v18, %v2645_v42  ;;  %v2701_v63 = vmul.f32 %v2572_v18, %v2575_v19 }
  0x5e   : > { %2211 = vset.pattern.permute.xlu1 %v2376_v7  ;;  %2212 = vset.pattern.permute.xlu0 %v2376_v7 }
  0x5f   : > { %742 = vperm.xlu1 %2211, %v270_v0   ;;  %738 = vperm.xlu0 %2212, %v269_v3  }
  0x63   : > { %734 = vperm.xlu1 %2211, %v268_v1   ;;  %2213 = vset.pattern.permute.xlu0 %v2377_v8 }
  0x64   : > { %336 = vperm.xlu0 %2213, %v270_v0  }
  0x67   : > { %730 = vperm.xlu1 %2211, %v267_v4  }
  0x68   : > { %324 = vperm.xlu0 %2213, %v267_v4  }
  0x6b   : > { %2214 = vset.pattern.permute.xlu1 %v2377_v8 }
  0x6c   : > { %332 = vperm.xlu1 %2214, %v269_v3   ;;  %2216 = vset.pattern.permute.xlu0 %v2378_v9 }
  0x6d   : > { %1089 = vperm.xlu0 %2216, %v269_v3  }
  0x70   : > { %328 = vperm.xlu1 %2214, %v268_v1  }
  0x71   : > { %2217 = vset.pattern.permute.xlu0 %v2379_v10 }
  0x72   : > { %1290 = vperm.xlu0 %2217, %v270_v0  }
  0x74   : > { %2215 = vset.pattern.permute.xlu1 %v2378_v9 }
  0x75   : > { %1093 = vperm.xlu1 %2215, %v270_v0  }
  0x76   : > { %1278 = vperm.xlu0 %2217, %v267_v4  }
  0x79   : > { %1085 = vperm.xlu1 %2215, %v268_v1  }
  0x7a   : > { %2220 = vset.pattern.permute.xlu0 %v2380_v11 }
  0x7b   : > { %1499 = vperm.xlu0 %2220, %v269_v3  }
  0x7d   : > { %1081 = vperm.xlu1 %2215, %v267_v4  }
  0x7f   : > { %2221 = vset.pattern.permute.xlu0 %v2381_v12 }
  0x80   : > { %1700 = vperm.xlu0 %2221, %v270_v0  }
  0x81   : > { %2218 = vset.pattern.permute.xlu1 %v2379_v10 }
  0x82   : > { %1286 = vperm.xlu1 %2218, %v269_v3  }
  0x84   : > { %1688 = vperm.xlu0 %2221, %v267_v4  }
  0x86   : > { %1282 = vperm.xlu1 %2218, %v268_v1  }
  0x8a   : > { %2219 = vset.pattern.permute.xlu1 %v2380_v11  ;;  %v2712_v11 = vmul.f32 %v2572_v18, %v2584_v23 }
  0x8b   : > { %1503 = vperm.xlu1 %2219, %v270_v0   ;;  %v2705_v0 = vmul.f32 %v2572_v18, %v2578_v20 }
  0x8c   : > { %3134 = vst [vmem:[#allocation20_spill] sm:$0xff] %v2712_v11 }
  0x8f   : > { %1495 = vperm.xlu1 %2219, %v268_v1  }
  0x93   : > { %1491 = vperm.xlu1 %2219, %v267_v4  }
  0x97   : > { %2222 = vset.pattern.permute.xlu1 %v2381_v12 }
  0x98   : > { %1696 = vperm.xlu1 %2222, %v269_v3  }
  0x9c   : > { %1692 = vperm.xlu1 %2222, %v268_v1  }
  0xc8   : > { %v404_v51 = vpop.permute.xlu0 %403  ;;  %v396_v52 = vpop.permute.xlu1 %395 }
  0xc9   : > { %v419_v57 = vadd.f32 %v404_v51, %v2587_v24  ;;  %v421_v58 = vadd.f32 %v404_v51, %v2590_v25  ;;  %v418_v59 = vadd.f32 %v404_v51, %v2593_v26  ;;  %v420_v60 = vadd.f32 %v404_v51, %v2596_v27 }
  0xca   : > { %v411_v8 = vadd.f32 %v396_v52, %v2648_v43  ;;  %v413_v9 = vadd.f32 %v396_v52, %v2651_v44  ;;  %v410_v10 = vadd.f32 %v396_v52, %v2654_v45 }
  0xcb   : > { %v435_v1 = vmax.f32 %v419_v57, 0.0  ;;  %v437_v2 = vmax.f32 %v421_v58, 0.0  ;;  %v434_v3 = vmax.f32 %v418_v59, 0.0  ;;  %v436_v4 = vmax.f32 %v420_v60, 0.0 }
  0xcc   : > { %v400_v5 = vpop.permute.xlu0 %399  ;;  %v392_v7 = vpop.permute.xlu1 %391  ;;  %v412_v58 = vadd.f32 %v396_v52, %v2657_v46  ;;  %v429_v20 = vmax.f32 %v413_v9, 0.0 }
  0xcd   : > { %466 = vmatprep.subr.mxu0 %v435_v1  ;;  %537 = vmatprep.subr.mxu1 %v437_v2  ;;  %v415_v12 = vadd.f32 %v400_v5, %v2612_v32  ;;  %v417_v21 = vadd.f32 %v400_v5, %v2615_v33  ;;  %v414_v51 = vadd.f32 %v400_v5, %v2618_v34 }
  0xce   : > { %467 = vmatpush1.msra.mxu0 %v434_v3  ;;  %538 = vmatpush1.msra.mxu1 %v436_v4  ;;  %v416_v57 = vadd.f32 %v400_v5, %v2639_v40  ;;  %v407_v59 = vadd.f32 %v392_v7, %v2668_v49  ;;  %v409_v1 = vadd.f32 %v392_v7, %v2671_v50  ;;  %v427_v5 = vmax.f32 %v411_v8, 0.0 }
  0xcf   : > { %v431_v60 = vmax.f32 %v415_v12, 0.0  ;;  %v433_v6 = vmax.f32 %v417_v21, 0.0  ;;  %v430_v42 = vmax.f32 %v414_v51, 0.0  ;;  %v406_v41 = vadd.f32 %v392_v7, %v2674_v53 }
  0xd0   : > { %v432_v2 = vmax.f32 %v416_v57, 0.0  ;;  %v408_v23 = vadd.f32 %v392_v7, %v2677_v54  ;;  %v2725_v3 = vmul.f32 %v2572_v18, %v2599_v28  ;;  %v2729_v12 = vmul.f32 %v2572_v18, %v2621_v35 }
  0xd1   : > { %v284_v4 = vpop.permute.xlu1 %283  ;;  %468 = vmatprep.subr.mxu0 %v431_v60  ;;  %539 = vmatprep.subr.mxu1 %v433_v6  ;;  %v289_v52 = vpop.permute.xlu0 %288  ;;  %v2733_v21 = vmul.f32 %v2572_v18, %v2624_v36  ;;  %v426_v57 = vmax.f32 %v410_v10, 0.0  ;;  %v428_v28 = vmax.f32 %v412_v58, 0.0  ;;  %v423_v6 = vmax.f32 %v407_v59, 0.0 }
  0xd2   : > { %3135 = vst [vmem:[#allocation21_spill] sm:$0xff] %v2725_v3  ;;  %v303_v7 = vadd.f32 %v289_v52, %v2632_v38  ;;  %v305_v51 = vadd.f32 %v289_v52, %v2636_v39  ;;  %469 = vmatpush1.msra.mxu0 %v430_v42  ;;  %540 = vmatpush1.msra.mxu1 %v432_v2  ;;  %v425_v8 = vmax.f32 %v409_v1, 0.0  ;;  %v422_v18 = vmax.f32 %v406_v41, 0.0  ;;  %v2743_v42 = vld [vmem:[%s3087_s2 + $0x1] sm:$0x1] }
  0xd3   : > { %470 = vmatprep.subr.mxu0 %v427_v5  ;;  %v304_v9 = vadd.f32 %v289_v52, %v2681_v55  ;;  %v306_v60 = vadd.f32 %v289_v52, %v2685_v56  ;;  %v299_v35 = vadd.f32 %v284_v4, %v2609_v31  ;;  %541 = vmatprep.subr.mxu1 %v429_v20  ;;  %v424_v36 = vmax.f32 %v408_v23, 0.0 }
  0xd4   : > { %471 = vmatpush1.msra.mxu0 %v426_v57  ;;  %v300_v10 = vadd.f32 %v284_v4, %v2701_v63  ;;  %v319_v58 = vmax.f32 %v303_v7, 0.0  ;;  %542 = vmatpush1.msra.mxu1 %v428_v28  ;;  %v302_v5 = vadd.f32 %v284_v4, %v2705_v0  ;;  %v301_v20 = vadd.f32 %v284_v4, %v2628_v37 }
  0xd5   : > { %v279_v59 = vpop.permute.xlu1 %278  ;;  %472 = vmatprep.subr.mxu0 %v423_v6  ;;  %v320_v1 = vmax.f32 %v304_v9, 0.0  ;;  %v322_v2 = vmax.f32 %v306_v60, 0.0  ;;  %v274_v52 = vpop.permute.xlu0 %273  ;;  %v321_v23 = vmax.f32 %v305_v51, 0.0  ;;  %543 = vmatprep.subr.mxu1 %v425_v8  ;;  %v315_v9 = vmax.f32 %v299_v35, 0.0 }
  0xd6   : > { %v295_v41 = vadd.f32 %v279_v59, %v2661_v47  ;;  %v297_v57 = vadd.f32 %v279_v59, %v2665_v48  ;;  %473 = vmatpush1.msra.mxu0 %v422_v18  ;;  %544 = vmatpush1.msra.mxu1 %v424_v36  ;;  %v291_v28 = vadd.f32 %v274_v52, %v2693_v61  ;;  %v316_v4 = vmax.f32 %v300_v10, 0.0 }
  0xd7   : > { %611 = vmatprep.subr.mxu0 %v320_v1  ;;  %v296_v7 = vadd.f32 %v279_v59, %v2712_v11  ;;  %v298_v6 = vadd.f32 %v279_v59, %v2725_v3  ;;  %682 = vmatprep.subr.mxu1 %v322_v2  ;;  %v293_v60 = vadd.f32 %v274_v52, %v2697_v62  ;;  %v318_v36 = vmax.f32 %v302_v5, 0.0 }
  0xd8   : > { %2103 = vmatmul.mubr.msk.f32.vlgmr.msra.gmra.mxu0 %vm438_vm0, %v2743_v42  ;;  %v292_v51 = vadd.f32 %v274_v52, %v2729_v12  ;;  %2104 = vmatmul.mubr.msk.f32.vlgmr.msra.gmra.mxu1 %vm438_vm0, %v2743_v42  ;;  %v294_v1 = vadd.f32 %v274_v52, %v2733_v21  ;;  %v317_v59 = vmax.f32 %v301_v20, 0.0  ;;  %v311_v35 = vmax.f32 %v295_v41, 0.0 }
  0xd9   : > { %612 = vmatpush1.msra.mxu0 %v319_v58  ;;  %v312_v8 = vmax.f32 %v296_v7, 0.0  ;;  %v314_v18 = vmax.f32 %v298_v6, 0.0  ;;  %683 = vmatpush1.msra.mxu1 %v321_v23  ;;  %v313_v48 = vmax.f32 %v297_v57, 0.0  ;;  %v307_v10 = vmax.f32 %v291_v28, 0.0 }
  0xda   : > { %613 = vmatprep.subr.mxu0 %v316_v4  ;;  %v743_v2 = vpop.permute.xlu1 %742  ;;  %v739_v3 = vpop.permute.xlu0 %738  ;;  %v308_v11 = vmax.f32 %v292_v51, 0.0  ;;  %684 = vmatprep.subr.mxu1 %v318_v36  ;;  %v310_v58 = vmax.f32 %v294_v1, 0.0  ;;  %v309_v5 = vmax.f32 %v293_v60, 0.0  ;;  %v2769_v57 = vstv %s2747_s6  ;;  %s2298_s6 = scalar_lea.vmem %s2010_s13, 128 }
  0xdb   : > { %v757_v47 = vadd.f32 %v743_v2, %v2593_v26  ;;  %614 = vmatpush1.msra.mxu0 %v315_v9  ;;  %v759_v7 = vadd.f32 %v743_v2, %v2596_v27  ;;  %685 = vmatpush1.msra.mxu1 %v317_v59  ;;  %v758_v52 = vadd.f32 %v743_v2, %v2587_v24  ;;  %v3136_v60 = vmov 0.0   ;;  %p2299_p13 = scmp.ne.s32.totalorder %s2010_s13, %s2298_s6  ;;  %p2306_p9 = scmp.lt.s32.totalorder %s2304_s19, %s2298_s6 }
  0xdc   : > { %615 = vmatprep.subr.mxu0 %v312_v8  ;;  %v760_v20 = vadd.f32 %v743_v2, %v2590_v25  ;;  %686 = vmatprep.subr.mxu1 %v314_v18  ;;  %v753_v23 = vadd.f32 %v739_v3, %v2618_v34  ;;  %v754_v41 = vadd.f32 %v739_v3, %v2612_v32  ;;  %v2777_v32 = vld [vmem:[%s3087_s2] sm:$0x1] }
  0xdd   : > { %616 = vmatpush1.msra.mxu0 %v311_v35  ;;  %v755_v26 = vadd.f32 %v739_v3, %v2639_v40  ;;  %687 = vmatpush1.msra.mxu1 %v313_v48  ;;  %v774_v27 = vmax.f32 %v758_v52, 0.0  ;;  %v756_v9 = vadd.f32 %v739_v3, %v2615_v33  ;;  %v773_v24 = vmax.f32 %v757_v47, 0.0  ;;  %p2300_p2 = pnand %p2299_p13, %p3150_p3  ;;  %p2307_p10 = por %p2306_p9, %p2305_p8 }
  0xde   : > { %617 = vmatprep.subr.mxu0 %v308_v11  ;;  %v735_v28 = vpop.permute.xlu1 %734  ;;  %v776_v6 = vmax.f32 %v760_v20, 0.0  ;;  %688 = vmatprep.subr.mxu1 %v310_v58  ;;  %v775_v48 = vmax.f32 %v759_v7, 0.0  ;;  %v770_v33 = vmax.f32 %v754_v41, 0.0  ;;  %v769_v3 = vmax.f32 %v753_v23, 0.0 }
  0xdf   : > { %v749_v25 = vadd.f32 %v735_v28, %v2654_v45  ;;  %618 = vmatpush1.msra.mxu0 %v307_v10  ;;  %v750_v34 = vadd.f32 %v735_v28, %v2648_v43  ;;  %v337_v40 = vpop.permute.xlu0 %336  ;;  %v751_v11 = vadd.f32 %v735_v28, %v2657_v46  ;;  %689 = vmatpush1.msra.mxu1 %v309_v5  ;;  %v772_v45 = vmax.f32 %v756_v9, 0.0  ;;  %p2301_p7 = pneg %p2300_p2 }
  0xe0   : > { %651 = vmatprep.mubr.f32.mxu0 %v3136_v60  ;;  %v752_v47 = vadd.f32 %v735_v28, %v2651_v44  ;;  %722 = vmatprep.mubr.f32.mxu1 %v3136_v60  ;;  %v2786_v4 = vmul.f32 %v2769_v57, %v2564_v15  ;;  %v2790_v43 = vmul.f32 %v2769_v57, %v2567_v16  ;;  %v771_v46 = vmax.f32 %v755_v26, 0.0 }
  0xe1   : > { %801 = vmatprep.subr.mxu0 %v774_v27  ;;  %v765_v51 = vmax.f32 %v749_v25, 0.0  ;;  %872 = vmatprep.subr.mxu1 %v776_v6  ;;  %v766_v36 = vmax.f32 %v750_v34, 0.0  ;;  %v352_v8 = vadd.f32 %v337_v40, %v2681_v55  ;;  %v767_v2 = vmax.f32 %v751_v11, 0.0  ;;  %p2308_p1 = pnand %p2307_p10, %p2301_p7 }
  0xe2   : > { %2105 = vmatmul.mubr.msk.f32.vlgmr.msra.gmra.mxu0 %vm438_vm0, %v2777_v32  ;;  %v731_v44 = vpop.permute.xlu1 %730  ;;  %2106 = vmatmul.mubr.msk.f32.vlgmr.msra.gmra.mxu1 %vm438_vm0, %v2777_v32  ;;  %v768_v59 = vmax.f32 %v752_v47, 0.0  ;;  %v354_v58 = vadd.f32 %v337_v40, %v2685_v56  ;;  %v2804_v55 = vmul.f32 %v2769_v57, %v2570_v17  ;;  %v2814_v52 = vmul.f32 %v2769_v57, %v2602_v29 }
  0xe3   : > { %802 = vmatpush1.msra.mxu0 %v773_v24  ;;  %v745_v18 = vadd.f32 %v731_v44, %v2674_v53  ;;  %v747_v1 = vadd.f32 %v731_v44, %v2677_v54  ;;  %v746_v35 = vadd.f32 %v731_v44, %v2668_v49  ;;  %873 = vmatpush1.msra.mxu1 %v775_v48  ;;  %v368_v23 = vmax.f32 %v352_v8, 0.0 }
  0xe4   : > { %803 = vmatprep.subr.mxu0 %v770_v33  ;;  %v748_v10 = vadd.f32 %v731_v44, %v2671_v50  ;;  %874 = vmatprep.subr.mxu1 %v772_v45  ;;  %v351_v53 = vadd.f32 %v337_v40, %v2632_v38  ;;  %v2809_v49 = vmul.f32 %v2769_v57, %v2581_v22  ;;  %v325_v38 = vpop.permute.xlu0 %324  ;;  %v370_v6 = vmax.f32 %v354_v58, 0.0 }
  0xe5   : > { %v761_v5 = vmax.f32 %v745_v18, 0.0  ;;  %804 = vmatpush1.msra.mxu0 %v769_v3  ;;  %v762_v54 = vmax.f32 %v746_v35, 0.0  ;;  %v763_v7 = vmax.f32 %v747_v1, 0.0  ;;  %875 = vmatpush1.msra.mxu1 %v771_v46  ;;  %v353_v50 = vadd.f32 %v337_v40, %v2636_v39  ;;  %v3137_v40 = vld [vmem:[#allocation11_spill] sm:$0xff]  ;;  %v3142_v1 = vld [vmem:[#allocation12_spill] sm:$0xff]  ;;  %v3143_v35 = vld [vmem:[#allocation13_spill] sm:$0xff] }
  0xe6   : > { %805 = vmatprep.subr.mxu0 %v766_v36  ;;  %v764_v56 = vmax.f32 %v748_v10, 0.0  ;;  %876 = vmatprep.subr.mxu1 %v768_v59  ;;  %v2818_v41 = vmul.f32 %v2769_v57, %v2605_v30  ;;  %v2822_v26 = vmul.f32 %v2769_v57, %v2558_v13  ;;  %v2826_v39 = vmul.f32 %v2769_v57, %v2561_v14  ;;  %v3139_v36 = vld [vmem:[#allocation19_spill] sm:$0xff] }
  0xe7   : > { %806 = vmatpush1.msra.mxu0 %v765_v51  ;;  %v333_v20 = vpop.permute.xlu1 %332  ;;  %877 = vmatpush1.msra.mxu1 %v767_v2  ;;  %v367_v24 = vmax.f32 %v351_v53, 0.0  ;;  %v2834_v34 = vmul.f32 %v2769_v57, %v2575_v19  ;;  %v2838_v48 = vmul.f32 %v2769_v57, %v3137_v40  ;;  %v340_v11 = vadd.f32 %v325_v38, %v2729_v12  ;;  %v3138_v51 = vld [vmem:[#allocation18_spill] sm:$0xff]  ;;  %v3140_v12 = vld [vmem:[#allocation20_spill] sm:$0xff] }
  0xe8   : > { %v347_v28 = vadd.f32 %v333_v20, %v2609_v31  ;;  %v349_v27 = vadd.f32 %v333_v20, %v2628_v37  ;;  %807 = vmatprep.subr.mxu0 %v762_v54  ;;  %v348_v9 = vadd.f32 %v333_v20, %v2701_v63  ;;  %878 = vmatprep.subr.mxu1 %v764_v56  ;;  %v369_v31 = vmax.f32 %v353_v50, 0.0  ;;  %v3144_v50 = vld [vmem:[#allocation16_spill] sm:$0xff] }
  0xe9   : > { %808 = vmatpush1.msra.mxu0 %v761_v5  ;;  %v350_v25 = vadd.f32 %v333_v20, %v2705_v0  ;;  %879 = vmatpush1.msra.mxu1 %v763_v7  ;;  %v339_v63 = vadd.f32 %v325_v38, %v2693_v61  ;;  %v341_v3 = vadd.f32 %v325_v38, %v2697_v62  ;;  %v3141_v62 = vld [vmem:[#allocation21_spill] sm:$0xff]  ;;  %v356_v53 = vmax.f32 %v340_v11, 0.0 }
  0xea   : > { %841 = vmatprep.mubr.f32.mxu0 %v3136_v60  ;;  %v364_v37 = vmax.f32 %v348_v9, 0.0  ;;  %v363_v33 = vmax.f32 %v347_v28, 0.0  ;;  %912 = vmatprep.mubr.f32.mxu1 %v3136_v60  ;;  %v342_v45 = vadd.f32 %v325_v38, %v2733_v21  ;;  %v365_v46 = vmax.f32 %v349_v27, 0.0  ;;  %v1090_v21 = vpop.permute.xlu0 %1089 }
  0xeb   : > { %943 = vmatprep.subr.mxu0 %v368_v23  ;;  %v329_v0 = vpop.permute.xlu1 %328  ;;  %v366_v47 = vmax.f32 %v350_v25, 0.0  ;;  %1014 = vmatprep.subr.mxu1 %v370_v6  ;;  %v2858_v59 = vmul.f32 %v2769_v57, %v3142_v1  ;;  %v2862_v2 = vmul.f32 %v2769_v57, %v3143_v35  ;;  %v2866_v56 = vmul.f32 %v2769_v57, %v3144_v50 }
  0xec   : > { %v343_v44 = vadd.f32 %v329_v0, %v3138_v51  ;;  %v345_v61 = vadd.f32 %v329_v0, %v3139_v36  ;;  %2107 = vmatmul.mubr.msk.f32.vlgmr.msra.gmra.mxu0 %vm438_vm0, %v2743_v42  ;;  %v344_v8 = vadd.f32 %v329_v0, %v3140_v12  ;;  %2108 = vmatmul.mubr.msk.f32.vlgmr.msra.gmra.mxu1 %vm438_vm0, %v2743_v42  ;;  %v355_v42 = vmax.f32 %v339_v63, 0.0 }
  0xed   : > { %944 = vmatpush1.msra.mxu0 %v367_v24  ;;  %v346_v18 = vadd.f32 %v329_v0, %v3141_v62  ;;  %1015 = vmatpush1.msra.mxu1 %v369_v31  ;;  %v358_v7 = vmax.f32 %v342_v45, 0.0  ;;  %v357_v20 = vmax.f32 %v341_v3, 0.0  ;;  %v1104_v38 = vadd.f32 %v1090_v21, %v2804_v55  ;;  %v3146_v0 = vld [vmem:[#allocation14_spill] sm:$0xff] }
  0xee   : > { %v359_v10 = vmax.f32 %v343_v44, 0.0  ;;  %v361_v58 = vmax.f32 %v345_v61, 0.0  ;;  %945 = vmatprep.subr.mxu0 %v364_v37  ;;  %v360_v5 = vmax.f32 %v344_v8, 0.0  ;;  %1016 = vmatprep.subr.mxu1 %v366_v47  ;;  %v1105_v28 = vadd.f32 %v1090_v21, %v2834_v34  ;;  %v3145_v37 = vld [vmem:[#allocation17_spill] sm:$0xff]  ;;  %v1291_v61 = vpop.permute.xlu0 %1290 }
  0xef   : > { %946 = vmatpush1.msra.mxu0 %v363_v33  ;;  %v362_v54 = vmax.f32 %v346_v18, 0.0  ;;  %1017 = vmatpush1.msra.mxu1 %v365_v46  ;;  %v1107_v27 = vadd.f32 %v1090_v21, %v2838_v48  ;;  %v1106_v25 = vadd.f32 %v1090_v21, %v2809_v49  ;;  %v2878_v63 = vmul.f32 %v2769_v57, %v3145_v37 }
  0xf0   : > { %v1094_v23 = vpop.permute.xlu1 %1093  ;;  %947 = vmatprep.subr.mxu0 %v360_v5  ;;  %v2882_v47 = vmul.f32 %v2769_v57, %v3146_v0  ;;  %v2885_v3 = vstv %s2846_s12  ;;  %v1120_v46 = vmax.f32 %v1104_v38, 0.0  ;;  %983 = vmatprep.mubr.f32.mxu0 %v3136_v60  ;;  %v1121_v36 = vmax.f32 %v1105_v28, 0.0 }
  0xf1   : > { %v1108_v6 = vadd.f32 %v1094_v23, %v2786_v4  ;;  %v1110_v9 = vadd.f32 %v1094_v23, %v2790_v43  ;;  %1018 = vmatprep.subr.mxu1 %v362_v54  ;;  %948 = vmatpush1.msra.mxu0 %v359_v10  ;;  %v1109_v24 = vadd.f32 %v1094_v23, %v2822_v26  ;;  %v1123_v62 = vmax.f32 %v1107_v27, 0.0 }
  0xf2   : > { %1019 = vmatpush1.msra.mxu1 %v361_v58  ;;  %949 = vmatprep.subr.mxu0 %v356_v53  ;;  %v1111_v31 = vadd.f32 %v1094_v23, %v2826_v39  ;;  %v1122_v21 = vmax.f32 %v1106_v25, 0.0  ;;  %v3147_v58 = vld [vmem:[#allocation15_spill] sm:$0xff]  ;;  %v2901_v53 = vmul.f32 %v2885_v3, %v2564_v15  ;;  %v1306_v15 = vadd.f32 %v1291_v61, %v2822_v26 }
  0xf3   : > { %v1124_v11 = vmax.f32 %v1108_v6, 0.0  ;;  %1020 = vmatprep.subr.mxu1 %v358_v7  ;;  %950 = vmatpush1.msra.mxu0 %v355_v42  ;;  %v1125_v33 = vmax.f32 %v1109_v24, 0.0  ;;  %v1126_v45 = vmax.f32 %v1110_v9, 0.0  ;;  %v2897_v5 = vmul.f32 %v2769_v57, %v3147_v58 }
  0xf4   : > { %v1086_v51 = vpop.permute.xlu1 %1085  ;;  %1021 = vmatpush1.msra.mxu1 %v357_v20  ;;  %v1127_v44 = vmax.f32 %v1111_v31, 0.0  ;;  %1054 = vmatprep.mubr.f32.mxu1 %v3136_v60  ;;  %v1305_v7 = vadd.f32 %v1291_v61, %v2786_v4  ;;  %v2908_v20 = vmul.f32 %v2885_v3, %v2567_v16  ;;  %v1308_v28 = vadd.f32 %v1291_v61, %v2826_v39 }
  0xf5   : > { %v1100_v12 = vadd.f32 %v1086_v51, %v2814_v52  ;;  %v1102_v8 = vadd.f32 %v1086_v51, %v2818_v41  ;;  %1155 = vmatprep.subr.mxu0 %v1125_v33  ;;  %v1101_v18 = vadd.f32 %v1086_v51, %v2858_v59  ;;  %2109 = vmatmul.mubr.msk.f32.vlgmr.msra.gmra.mxu0 %vm438_vm0, %v2777_v32 }
  0xf6   : > { %1226 = vmatprep.subr.mxu1 %v1127_v44  ;;  %v1103_v10 = vadd.f32 %v1086_v51, %v2862_v2  ;;  %2110 = vmatmul.mubr.msk.f32.vlgmr.msra.gmra.mxu1 %vm438_vm0, %v2777_v32  ;;  %v1307_v16 = vadd.f32 %v1291_v61, %v2790_v43  ;;  %v2919_v9 = vmul.f32 %v2885_v3, %v2570_v17  ;;  %v2929_v43 = vld [vmem:[%s3087_s2 + $0x2] sm:$0x1]  ;;  %v1322_v17 = vmax.f32 %v1306_v15, 0.0 }
  0xf7   : > { %v1116_v42 = vmax.f32 %v1100_v12, 0.0  ;;  %1156 = vmatpush1.msra.mxu0 %v1124_v11  ;;  %v1117_v54 = vmax.f32 %v1101_v18, 0.0  ;;  %v1118_v23 = vmax.f32 %v1102_v8, 0.0  ;;  %1227 = vmatpush1.msra.mxu1 %v1126_v45  ;;  %v2923_v25 = vmul.f32 %v2885_v3, %v2581_v22  ;;  %v1279_v11 = vpop.permute.xlu0 %1278 }
  0xf8   : > { %1157 = vmatprep.subr.mxu0 %v1121_v36  ;;  %v1082_v57 = vpop.permute.xlu1 %1081  ;;  %v1119_v38 = vmax.f32 %v1103_v10, 0.0  ;;  %1228 = vmatprep.subr.mxu1 %v1123_v62  ;;  %v2933_v33 = vmul.f32 %v2885_v3, %v2602_v29  ;;  %v2937_v45 = vmul.f32 %v2885_v3, %v2605_v30  ;;  %v1321_v22 = vmax.f32 %v1305_v7, 0.0 }
  0xf9   : > { %v1096_v32 = vadd.f32 %v1082_v57, %v2866_v56  ;;  %v1098_v27 = vadd.f32 %v1082_v57, %v2878_v63  ;;  %1158 = vmatpush1.msra.mxu0 %v1120_v46  ;;  %v1097_v4 = vadd.f32 %v1082_v57, %v2882_v47  ;;  %1229 = vmatpush1.msra.mxu1 %v1122_v21  ;;  %v1324_v51 = vmax.f32 %v1308_v28, 0.0 }
  0xfa   : > { %1159 = vmatprep.subr.mxu0 %v1117_v54  ;;  %v1099_v6 = vadd.f32 %v1082_v57, %v2897_v5  ;;  %1230 = vmatprep.subr.mxu1 %v1119_v38  ;;  %v2942_v44 = vmul.f32 %v2885_v3, %v2558_v13  ;;  %v2946_v36 = vmul.f32 %v2885_v3, %v2561_v14  ;;  %v1323_v29 = vmax.f32 %v1307_v16, 0.0 }
  0xfb   : > { %v1112_v26 = vmax.f32 %v1096_v32, 0.0  ;;  %v1114_v39 = vmax.f32 %v1098_v27, 0.0  ;;  %1160 = vmatpush1.msra.mxu0 %v1116_v42  ;;  %v1113_v24 = vmax.f32 %v1097_v4, 0.0  ;;  %1231 = vmatpush1.msra.mxu1 %v1118_v23  ;;  %v2956_v8 = vmul.f32 %v2885_v3, %v2575_v19  ;;  %v1500_v7 = vpop.permute.xlu0 %1499 }
  0xfc   : > { %v1115_v31 = vmax.f32 %v1099_v6, 0.0  ;;  %1195 = vmatprep.mubr.f32.mxu0 %v3136_v60  ;;  %1266 = vmatprep.mubr.f32.mxu1 %v3136_v60  ;;  %v2960_v14 = vmul.f32 %v2885_v3, %v3137_v40  ;;  %v1294_v62 = vadd.f32 %v1279_v11, %v2882_v47  ;;  %v1293_v19 = vadd.f32 %v1279_v11, %v2866_v56 }
  0xfd   : > { %v1287_v46 = vpop.permute.xlu1 %1286  ;;  %1161 = vmatprep.subr.mxu0 %v1113_v24  ;;  %v1295_v21 = vadd.f32 %v1279_v11, %v2878_v63  ;;  %v1296_v40 = vadd.f32 %v1279_v11, %v2897_v5  ;;  %v2974_v56 = vmul.f32 %v2885_v3, %v3142_v1  ;;  %v2978_v63 = vmul.f32 %v2885_v3, %v3143_v35 }
  0xfe   : > { %v1301_v61 = vadd.f32 %v1287_v46, %v2804_v55  ;;  %v1303_v30 = vadd.f32 %v1287_v46, %v2809_v49  ;;  %1232 = vmatprep.subr.mxu1 %v1115_v31  ;;  %1162 = vmatpush1.msra.mxu0 %v1112_v26  ;;  %v1302_v12 = vadd.f32 %v1287_v46, %v2834_v34  ;;  %v1310_v23 = vmax.f32 %v1294_v62, 0.0 }
  0xff   : > { %1233 = vmatpush1.msra.mxu1 %v1114_v39  ;;  %2112 = vmatmul.mubr.msk.f32.vlgmr.msra.gmra.mxu0 %vm438_vm0, %v2929_v43  ;;  %v1304_v13 = vadd.f32 %v1287_v46, %v2838_v48  ;;  %v1312_v38 = vmax.f32 %v1296_v40, 0.0  ;;  %v1311_v1 = vmax.f32 %v1295_v21, 0.0  ;;  %v1514_v35 = vadd.f32 %v1500_v7, %v2919_v9 }
 0x100   : > { %v1317_v55 = vmax.f32 %v1301_v61, 0.0  ;;  %v1319_v49 = vmax.f32 %v1303_v30, 0.0  ;;  %2113 = vmatmul.mubr.msk.f32.vlgmr.msra.gmra.mxu1 %vm438_vm0, %v2929_v43  ;;  %1349 = vmatprep.subr.mxu0 %v1322_v17  ;;  %v1318_v34 = vmax.f32 %v1302_v12, 0.0  ;;  %v1516_v28 = vadd.f32 %v1500_v7, %v2923_v25 }
 0x101   : > { %1420 = vmatprep.subr.mxu1 %v1324_v51  ;;  %v1283_v18 = vpop.permute.xlu1 %1282  ;;  %1350 = vmatpush1.msra.mxu0 %v1321_v22  ;;  %v1320_v48 = vmax.f32 %v1304_v13, 0.0  ;;  %v1517_v32 = vadd.f32 %v1500_v7, %v2960_v14  ;;  %v2992_v26 = vmul.f32 %v2885_v3, %v3144_v50  ;;  %v2996_v39 = vmul.f32 %v2885_v3, %v3146_v0 }
 0x102   : > { %v1297_v10 = vadd.f32 %v1283_v18, %v2814_v52  ;;  %v1299_v42 = vadd.f32 %v1283_v18, %v2818_v41  ;;  %1421 = vmatpush1.msra.mxu1 %v1323_v29  ;;  %1351 = vmatprep.subr.mxu0 %v1318_v34  ;;  %v1298_v54 = vadd.f32 %v1283_v18, %v2858_v59  ;;  %v1309_v59 = vmax.f32 %v1293_v19, 0.0  ;;  %v1701_v34 = vpop.permute.xlu0 %1700 }
 0x103   : > { %1422 = vmatprep.subr.mxu1 %v1320_v48  ;;  %1352 = vmatpush1.msra.mxu0 %v1317_v55  ;;  %v1300_v47 = vadd.f32 %v1283_v18, %v2862_v2  ;;  %v1515_v2 = vadd.f32 %v1500_v7, %v2956_v8  ;;  %v1530_v22 = vmax.f32 %v1514_v35, 0.0  ;;  %v1533_v29 = vmax.f32 %v1517_v32, 0.0  ;;  %v1489_v7 = vld [vmem:[%s3087_s2 + $0x3] sm:$0x1] }
 0x104   : > { %v1313_v52 = vmax.f32 %v1297_v10, 0.0  ;;  %v1315_v5 = vmax.f32 %v1299_v42, 0.0  ;;  %1423 = vmatpush1.msra.mxu1 %v1319_v49  ;;  %v1314_v41 = vmax.f32 %v1298_v54, 0.0  ;;  %1389 = vmatprep.mubr.f32.mxu0 %v3136_v60  ;;  %v3002_v50 = vmul.f32 %v2885_v3, %v3145_v37 }
 0x105   : > { %v1316_v57 = vmax.f32 %v1300_v47, 0.0  ;;  %1460 = vmatprep.mubr.f32.mxu1 %v3136_v60  ;;  %v1531_v11 = vmax.f32 %v1515_v2, 0.0  ;;  %v1532_v0 = vmax.f32 %v1516_v28, 0.0  ;;  %v1476_v55 = vmul.f32 %v2885_v3, %v3147_v58 }
 0x106   : > { %v1504_v15 = vpop.permute.xlu1 %1503  ;;  %1353 = vmatprep.subr.mxu0 %v1314_v41  ;;  %v1716_v19 = vadd.f32 %v1701_v34, %v2942_v44  ;;  %v1718_v21 = vadd.f32 %v1701_v34, %v2946_v36  ;;  %v1717_v10 = vadd.f32 %v1701_v34, %v2908_v20 }
 0x107   : > { %v1518_v27 = vadd.f32 %v1504_v15, %v2901_v53  ;;  %v1520_v4 = vadd.f32 %v1504_v15, %v2908_v20  ;;  %1424 = vmatprep.subr.mxu1 %v1316_v57  ;;  %1354 = vmatpush1.msra.mxu0 %v1313_v52  ;;  %v1519_v16 = vadd.f32 %v1504_v15, %v2942_v44 }
 0x108   : > { %1425 = vmatpush1.msra.mxu1 %v1315_v5  ;;  %1355 = vmatprep.subr.mxu0 %v1310_v23  ;;  %v1521_v6 = vadd.f32 %v1504_v15, %v2946_v36  ;;  %v1732_v47 = vmax.f32 %v1716_v19, 0.0  ;;  %v1734_v20 = vmax.f32 %v1718_v21, 0.0  ;;  %v1733_v41 = vmax.f32 %v1717_v10, 0.0  ;;  %v1689_v23 = vpop.permute.xlu0 %1688 }
 0x109   : > { %v1534_v24 = vmax.f32 %v1518_v27, 0.0  ;;  %v1536_v31 = vmax.f32 %v1520_v4, 0.0  ;;  %1426 = vmatprep.subr.mxu1 %v1312_v38  ;;  %1356 = vmatpush1.msra.mxu0 %v1309_v59  ;;  %v1535_v17 = vmax.f32 %v1519_v16, 0.0  ;;  %v1704_v28 = vadd.f32 %v1689_v23, %v2996_v39 }
 0x10a   : > { %1427 = vmatpush1.msra.mxu1 %v1311_v1  ;;  %v1496_v46 = vpop.permute.xlu1 %1495  ;;  %2114 = vmatmul.mubr.msk.f32.vlgmr.msra.gmra.mxu0 %vm438_vm0, %v2929_v43  ;;  %v1537_v51 = vmax.f32 %v1521_v6, 0.0  ;;  %v1703_v16 = vadd.f32 %v1689_v23, %v2992_v26  ;;  %v1705_v6 = vadd.f32 %v1689_v23, %v3002_v50 }
 0x10b   : > { %v1510_v61 = vadd.f32 %v1496_v46, %v2933_v33  ;;  %v1512_v30 = vadd.f32 %v1496_v46, %v2937_v45  ;;  %2115 = vmatmul.mubr.msk.f32.vlgmr.msra.gmra.mxu1 %vm438_vm0, %v2929_v43  ;;  %1565 = vmatprep.subr.mxu0 %v1535_v17  ;;  %v1511_v12 = vadd.f32 %v1496_v46, %v2974_v56 }
 0x10c   : > { %1636 = vmatprep.subr.mxu1 %v1537_v51  ;;  %1566 = vmatpush1.msra.mxu0 %v1534_v24  ;;  %v1513_v13 = vadd.f32 %v1496_v46, %v2978_v63  ;;  %v1715_v43 = vadd.f32 %v1701_v34, %v2901_v53 }
 0x10d   : > { %v1526_v37 = vmax.f32 %v1510_v61, 0.0  ;;  %v1528_v49 = vmax.f32 %v1512_v30, 0.0  ;;  %1637 = vmatpush1.msra.mxu1 %v1536_v31  ;;  %1567 = vmatprep.subr.mxu0 %v1531_v11  ;;  %v1527_v62 = vmax.f32 %v1511_v12, 0.0 }
 0x10e   : > { %1638 = vmatprep.subr.mxu1 %v1533_v29  ;;  %v1492_v18 = vpop.permute.xlu1 %1491  ;;  %1568 = vmatpush1.msra.mxu0 %v1530_v22  ;;  %v1529_v48 = vmax.f32 %v1513_v13, 0.0  ;;  %v1731_v52 = vmax.f32 %v1715_v43, 0.0 }
 0x10f   : > { %1639 = vmatpush1.msra.mxu1 %v1532_v0  ;;  %1569 = vmatprep.subr.mxu0 %v1527_v62  ;;  %v1506_v3 = vadd.f32 %v1492_v18, %v2992_v26  ;;  %v1508_v58 = vadd.f32 %v1492_v18, %v3002_v50  ;;  %v1507_v40 = vadd.f32 %v1492_v18, %v2996_v39 }
 0x110   : > { %1640 = vmatprep.subr.mxu1 %v1529_v48  ;;  %1570 = vmatpush1.msra.mxu0 %v1526_v37  ;;  %v1509_v42 = vadd.f32 %v1492_v18, %v1476_v55 }
 0x111   : > { %1641 = vmatpush1.msra.mxu1 %v1528_v49  ;;  %v1523_v53 = vmax.f32 %v1507_v40, 0.0  ;;  %v1522_v54 = vmax.f32 %v1506_v3, 0.0  ;;  %1605 = vmatprep.mubr.f32.mxu0 %v3136_v60  ;;  %v1524_v44 = vmax.f32 %v1508_v58, 0.0 }
 0x112   : > { %v1525_v36 = vmax.f32 %v1509_v42, 0.0  ;;  %1676 = vmatprep.mubr.f32.mxu1 %v3136_v60 }
 0x113   : > { %v1697_v5 = vpop.permute.xlu1 %1696  ;;  %1571 = vmatprep.subr.mxu0 %v1523_v53 }
 0x114   : > { %v1711_v59 = vadd.f32 %v1697_v5, %v2919_v9  ;;  %v1713_v57 = vadd.f32 %v1697_v5, %v2923_v25  ;;  %1642 = vmatprep.subr.mxu1 %v1525_v36  ;;  %1572 = vmatpush1.msra.mxu0 %v1522_v54  ;;  %v1712_v38 = vadd.f32 %v1697_v5, %v2956_v8 }
 0x115   : > { %1643 = vmatpush1.msra.mxu1 %v1524_v44  ;;  %2117 = vmatmul.mubr.msk.f32.vlgmr.msra.gmra.mxu0 %vm438_vm0, %v1489_v7  ;;  %v1714_v2 = vadd.f32 %v1697_v5, %v2960_v14  ;;  %v1706_v9 = vadd.f32 %v1689_v23, %v1476_v55 }
 0x116   : > { %v1727_v1 = vmax.f32 %v1711_v59, 0.0  ;;  %v1729_v15 = vmax.f32 %v1713_v57, 0.0  ;;  %2118 = vmatmul.mubr.msk.f32.vlgmr.msra.gmra.mxu1 %vm438_vm0, %v1489_v7  ;;  %1759 = vmatprep.subr.mxu0 %v1732_v47  ;;  %v1728_v35 = vmax.f32 %v1712_v38, 0.0 }
 0x117   : > { %1830 = vmatprep.subr.mxu1 %v1734_v20  ;;  %v1693_v25 = vpop.permute.xlu1 %1692  ;;  %1760 = vmatpush1.msra.mxu0 %v1731_v52  ;;  %v1730_v32 = vmax.f32 %v1714_v2, 0.0 }
 0x118   : > { %v1707_v8 = vadd.f32 %v1693_v25, %v2933_v33  ;;  %v1708_v27 = vadd.f32 %v1693_v25, %v2974_v56  ;;  %v1709_v4 = vadd.f32 %v1693_v25, %v2937_v45  ;;  %v1710_v14 = vadd.f32 %v1693_v25, %v2978_v63  ;;  %1831 = vmatpush1.msra.mxu1 %v1733_v41 }
 0x119   : > { %1761 = vmatprep.subr.mxu0 %v1728_v35  ;;  %1832 = vmatprep.subr.mxu1 %v1730_v32  ;;  %v1720_v33 = vmax.f32 %v1704_v28, 0.0  ;;  %v1722_v45 = vmax.f32 %v1706_v9, 0.0  ;;  %v1719_v56 = vmax.f32 %v1703_v16, 0.0  ;;  %v1721_v63 = vmax.f32 %v1705_v6, 0.0 }
 0x11a   : > { %v1723_v39 = vmax.f32 %v1707_v8, 0.0  ;;  %v1725_v24 = vmax.f32 %v1709_v4, 0.0  ;;  %1762 = vmatpush1.msra.mxu0 %v1727_v1  ;;  %1833 = vmatpush1.msra.mxu1 %v1729_v15  ;;  %v1724_v31 = vmax.f32 %v1708_v27, 0.0  ;;  %v1726_v17 = vmax.f32 %v1710_v14, 0.0 }
 0x11b   : > { %1799 = vmatprep.mubr.f32.mxu0 %v3136_v60  ;;  %1870 = vmatprep.mubr.f32.mxu1 %v3136_v60 }
 0x11c   : > { %1763 = vmatprep.subr.mxu0 %v1724_v31  ;;  %1834 = vmatprep.subr.mxu1 %v1726_v17 }
 0x11d   : > { %1764 = vmatpush1.msra.mxu0 %v1723_v39  ;;  %1835 = vmatpush1.msra.mxu1 %v1725_v24 }
 0x11e   : > { %1765 = vmatprep.subr.mxu0 %v1720_v33  ;;  %1836 = vmatprep.subr.mxu1 %v1722_v45 }
 0x11f   : > { %1766 = vmatpush1.msra.mxu0 %v1719_v56  ;;  %1837 = vmatpush1.msra.mxu1 %v1721_v63 }
 0x120   : > { %2119 = vmatmul.mubr.msk.f32.vlgmr.msra.gmra.mxu0 %vm438_vm0, %v1489_v7  ;;  %2120 = vmatmul.mubr.msk.f32.vlgmr.msra.gmra.mxu1 %vm438_vm0, %v1489_v7 }
 0x198   : > { %v508_v26 = vpop.f32.mrf.mxu0  ;;  %v579_v11 = vpop.f32.mrf.mxu1 }
 0x19a   : > { %v510_v22 = vpop.f32.mrf.mxu0  ;;  %v581_v60 = vpop.f32.mrf.mxu1 }
 0x1a2   : > { %v653_v46 = vpop.f32.mrf.mxu0  ;;  %v724_v51 = vpop.f32.mrf.mxu1 }
 0x1a3   : > { %v654_v21 = vadd.f32 %v653_v46, %v508_v26  ;;  %v725_v3 = vadd.f32 %v724_v51, %v579_v11 }
 0x1a4   : > { %v655_v29 = vpop.f32.mrf.mxu0  ;;  %v726_v50 = vpop.f32.mrf.mxu1 }
 0x1a5   : > { %v656_v40 = vadd.f32 %v655_v29, %v510_v22  ;;  %v727_v53 = vadd.f32 %v726_v50, %v581_v60 }
 0x1ac   : > { %v843_v0 = vpop.f32.mrf.mxu0  ;;  %v914_v61 = vpop.f32.mrf.mxu1 }
 0x1ae   : > { %v845_v30 = vpop.f32.mrf.mxu0  ;;  %v916_v12 = vpop.f32.mrf.mxu1 }
 0x1b5   : > { %v985_v13 = vpop.f32.mrf.mxu0 }
 0x1b6   : > { %v1056_v55 = vpop.f32.mrf.mxu1  ;;  %v986_v15 = vadd.f32 %v985_v13, %v843_v0  ;;  %v2382_v0 = vmov 1966171168  }
 0x1b7   : > { %v987_v37 = vpop.f32.mrf.mxu0  ;;  %v1057_v35 = vadd.f32 %v1056_v55, %v914_v61  ;;  %v1912_v61 = vunpack.c.l.s4 %v2382_v0 }
 0x1b8   : > { %v1058_v49 = vpop.f32.mrf.mxu1  ;;  %v988_v28 = vadd.f32 %v987_v37, %v845_v30  ;;  %v1914_v30 = vlaneseq }
 0x1b9   : > { %v1059_v9 = vadd.f32 %v1058_v49, %v916_v12 }
 0x1ba   : > { %vm3042_vm1 = vcmp.lt.s32.totalorder %v1914_v30, 512 }
 0x1bf   : > { %v1197_v34 = vpop.f32.mrf.mxu0 }
 0x1c0   : > { %v1268_v62 = vpop.f32.mrf.mxu1  ;;  %v1273_v10 = vadd.f32 %v1197_v34, %v654_v21  ;;  %v1913_v34 = vunpack.c.0.s8 %v1912_v61 }
 0x1c1   : > { %v1199_v18 = vpop.f32.mrf.mxu0  ;;  %v1275_v54 = vadd.f32 %v1268_v62, %v725_v3  ;;  %v1915_v62 = vshrl.u32 %v1914_v30, 7 }
 0x1c2   : > { %v1270_v43 = vpop.f32.mrf.mxu1  ;;  %v1274_v36 = vadd.f32 %v1199_v18, %v656_v40 }
 0x1c3   : > { %v1276_v52 = vadd.f32 %v1270_v43, %v727_v53  ;;  %v1916_v3 = vsub.s32 %v1913_v34, %v1915_v62 }
 0x1ca   : > { %v1391_v48 = vpop.f32.mrf.mxu0 }
 0x1cb   : > { %v1462_v19 = vpop.f32.mrf.mxu1  ;;  %v1467_v25 = vadd.f32 %v1391_v48, %v986_v15 }
 0x1cc   : > { %v1393_v58 = vpop.f32.mrf.mxu0  ;;  %v1469_v32 = vadd.f32 %v1462_v19, %v1057_v35 }
 0x1cd   : > { %v1464_v42 = vpop.f32.mrf.mxu1  ;;  %v1468_v4 = vadd.f32 %v1393_v58, %v988_v28 }
 0x1ce   : > { %v1470_v14 = vadd.f32 %v1464_v42, %v1059_v9 }
 0x1d5   : > { %v1607_v44 = vpop.f32.mrf.mxu0 }
 0x1d6   : > { %v1683_v7 = vadd.f32 %v1607_v44, %v1273_v10  ;;  %v1678_v47 = vpop.f32.mrf.mxu1 }
 0x1d7   : > { %v1685_v5 = vadd.f32 %v1678_v47, %v1275_v54  ;;  %v1609_v20 = vpop.f32.mrf.mxu0 }
 0x1d8   : > { %v2121_v41 = vmul.f32 -1.442695, %v1683_v7  ;;  %v1684_v23 = vadd.f32 %v1609_v20, %v1274_v36  ;;  %v1680_v59 = vpop.f32.mrf.mxu1 }
 0x1d9   : > { %v2123_v57 = vmul.f32 -1.442695, %v1685_v5  ;;  %v1686_v38 = vadd.f32 %v1680_v59, %v1276_v52 }
 0x1da   : > { %2223 = vpow2.f32 %v2121_v41  ;;  %v2122_v2 = vmul.f32 -1.442695, %v1684_v23 }
 0x1db   : > { %2225 = vpow2.f32 %v2123_v57  ;;  %v2124_v1 = vmul.f32 -1.442695, %v1686_v38 }
 0x1dc   : > { %2227 = vpow2.f32 %v2122_v2 }
 0x1dd   : > { %2229 = vpow2.f32 %v2124_v1 }
 0x1e0   : > { %v1801_v8 = vpop.f32.mrf.mxu0  ;;  %v1872_v27 = vpop.f32.mrf.mxu1 }
 0x1e1   : > { %v1877_v16 = vadd.f32 %v1801_v8, %v1467_v25  ;;  %v1879_v6 = vadd.f32 %v1872_v27, %v1469_v32 }
 0x1e2   : > { %v1803_v39 = vpop.f32.mrf.mxu0  ;;  %v1874_v24 = vpop.f32.mrf.mxu1 }
 0x1e3   : > { %v2125_v31 = vmul.f32 -1.442695, %v1877_v16  ;;  %v2127_v17 = vmul.f32 -1.442695, %v1879_v6  ;;  %v1878_v33 = vadd.f32 %v1803_v39, %v1468_v4  ;;  %v1880_v45 = vadd.f32 %v1874_v24, %v1470_v14 }
 0x1e5   : > { %2231 = vpow2.f32 %v2125_v31  ;;  %v2126_v56 = vmul.f32 -1.442695, %v1878_v33  ;;  %v2128_v63 = vmul.f32 -1.442695, %v1880_v45 }
 0x1e6   : > { %2233 = vpow2.f32 %v2127_v17 }
 0x1e7   : > { %v2224_v26 = vpop.eup %2223  ;;  %2235 = vpow2.f32 %v2126_v56 }
 0x1e8   : > { %v2226_v11 = vpop.eup %2225  ;;  %v1893_v22 = vadd.f32 1.0, %v2224_v26  ;;  %2237 = vpow2.f32 %v2128_v63 }
 0x1e9   : > { %v2228_v60 = vpop.eup %2227  ;;  %v1895_v46 = vadd.f32 1.0, %v2226_v11 }
 0x1ea   : > { %v2230_v51 = vpop.eup %2229  ;;  %2239 = vrcp.f32 %v1893_v22  ;;  %v1894_v29 = vadd.f32 1.0, %v2228_v60 }
 0x1eb   : > { %2241 = vrcp.f32 %v1895_v46  ;;  %v1896_v50 = vadd.f32 1.0, %v2230_v51 }
 0x1ec   : > { %2243 = vrcp.f32 %v1894_v29 }
 0x1ed   : > { %2245 = vrcp.f32 %v1896_v50 }
 0x1f2   : > { %v2232_v12 = vpop.eup %2231 }
 0x1f3   : > { %v2234_v13 = vpop.eup %2233  ;;  %v1951_v55 = vadd.f32 1.0, %v2232_v12 }
 0x1f4   : > { %v2236_v37 = vpop.eup %2235  ;;  %v1953_v49 = vadd.f32 1.0, %v2234_v13 }
 0x1f5   : > { %v2238_v18 = vpop.eup %2237  ;;  %2247 = vrcp.f32 %v1951_v55  ;;  %v1952_v43 = vadd.f32 1.0, %v2236_v37 }
 0x1f6   : > { %2249 = vrcp.f32 %v1953_v49  ;;  %v1954_v48 = vadd.f32 1.0, %v2238_v18 }
 0x1f7   : > { %v2240_v19 = vpop.eup %2239  ;;  %2251 = vrcp.f32 %v1952_v43 }
 0x1f8   : > { %v2242_v21 = vpop.eup %2241  ;;  %2253 = vrcp.f32 %v1954_v48 }
 0x1f9   : > { %v2244_v58 = vpop.eup %2243 }
 0x1fa   : > { %v2246_v40 = vpop.eup %2245  ;;  %v1909_v10 = vcombine.low %v2240_v19, %v2244_v58 }
 0x1fb   : > { %v1910_v42 = vcombine.low %v2242_v21, %v2246_v40 }
 0x1fc   : > { %v1917_v53 = vrot.slane %v1909_v10, %v1916_v3 }
 0x1fd   : > { %v1924_v54 = vrot.slane %v1910_v42, %v1916_v3 }
 0x1ff   : > { %v1925_v44 = vcombine.low %v1917_v53, %v1924_v54 }
 0x201   : > { %v1932_v7 = vrot.slane %v1925_v44, %v1916_v3 }
 0x202   : > { %v2248_v47 = vpop.eup %2247 }
 0x203   : > { %v2250_v52 = vpop.eup %2249  ;;  %1938 = vst.msk [vmem:[%s229_s8] ss:$2 sm:$0xf] %vm3042_vm1, %v1932_v7 }
 0x204   : > { %v2252_v5 = vpop.eup %2251 }
 0x205   : > { %v2254_v20 = vpop.eup %2253  ;;  %v1967_v41 = vcombine.low %v2248_v47, %v2252_v5 }
 0x206   : > { %v1968_v23 = vcombine.low %v2250_v52, %v2254_v20 }
 0x207   : > { %v1975_v59 = vrot.slane %v1967_v41, %v1916_v3 }
 0x208   : > { %v1982_v57 = vrot.slane %v1968_v23, %v1916_v3 }
 0x20a   : > { %v1983_v38 = vcombine.low %v1975_v59, %v1982_v57 }
 0x20c   : > { %v1990_v2 = vrot.slane %v1983_v38, %v1916_v3 }
 0x20e   : > { %2129 = vst.msk [vmem:[%s229_s8 + $0x1] ss:$2 sm:$0xf] %vm3042_vm1, %v1990_v2 }
 0x20f   : > { %2311 = shalt.err (!%p2308_p1)
}
 0x210   : > { %s2312_s12 = scalar_lea.hbm %s2007_s23, 128  ;;  %s2316_s9 = scalar_lea.hbm %s3089_s4, 256 }
 0x211   : > { %p2313_p4 = scmp.ne.s32.totalorder %s2007_s23, %s2312_s12  ;;  %p2317_p12 = scmp.lt.s32.totalorder %s2007_s23, %s3089_s4 }
 0x212   : > { %p2318_p0 = scmp.lt.s32.totalorder %s2316_s9, %s2312_s12 }
 0x213   : > { %p2314_p11 = pnand %p2313_p4, %p3150_p3 }
 0x214   : > { %p2319_p6 = por %p2318_p0, %p2317_p12 }
 0x215   : > { %p2315_p5 = pneg %p2314_p11 }
 0x217   : > { %p2320_p13 = pnand %p2319_p6, %p2315_p5 }
 0x219   : > { %2323 = shalt.err (!%p2320_p13)
}
 0x21a   : > { %2143 = dma.vmem_to_hbm [thread:$0]  (%p3150_p3), %s2010_s13, 128, %s2007_s23, %s1995_s5  }
 0x21b PF: > { %s2021_s30 = sand.u32 1, %s2354_s15   ;;  %p3151_p2 = scmp.ne.s32.totalorder %s3117_s28, 0 }
 0x21c   : > { %p3152_p7 = scmp.ge.s32.totalorder %s2366_s18, 2  ;;  %s2022_s8 = scalar_lea.sflag [#allocation4], %s2021_s30 }
 0x21e   : > { %p2154_p8 = pnand %p3152_p7, %p3151_p2 }
 0x220   : > { %p2155_p9 = pneg %p2154_p8 }
 0x222   : > { %2349 = dma.done.wait (%p2155_p9), %s2022_s8, 128  }
 0x223   : > { %2351 = vsyncadd (%p2155_p9), %s2022_s8, 4294967168  ;;  %p18_p10 = scmp.ge.s32.totalorder %s2434_s21, 4   ;;  %s3153_s15 = smov %s2358_s16 }
 0x224   : > { %s3154_s16 = smov %s2362_s17  ;;  %s3155_s17 = smov %s2446_s24 }
 0x225   : > { %s3156_s18 = smov %s2434_s21  ;;  %20 = sbr.rel (!%p18_p10) target bundleno = 6 (0x6), region = 87 }
 0x22a   :  { %2027 = vsyncpa [#allocation3], 1 }
 0x22b   :  { %2029 = vsyncpa [#allocation3 + $0x1], 1 }
 0x22c   :  { %2030 = vsyncpa [#allocation4], 1 }
 0x22d   :  { %2032 = vsyncpa [#allocation4 + $0x1], 1 }
 0x22e   :  { %2033 = vsyncpa [#allocation5], 1 }
 0x22f   :  { %2035 = vsyncpa [#allocation5 + $0x1], 1 }

</bundles_post_ra>
